<compile_context>
chip_gen: v5e
topology: v5e:2x2
jax: 0.10.0
libtpu: 0.0.40
codegen_flags: <defaults>
</compile_context>

<pallas_src>
import jax
import jax.numpy as jnp
from jax.experimental import pallas as pl
from jax.experimental.pallas import tpu as pltpu

# ----------------------------- small config -----------------------------
VOCAB = 256
HIDDEN = 128
N_HEADS = 4
N_KV_HEADS = 2
HEAD_DIM = HIDDEN // N_HEADS          # 32
HALF = HEAD_DIM // 2                  # 16
Q_SIZE = N_HEADS * HEAD_DIM           # 128
KV_SIZE = N_KV_HEADS * HEAD_DIM       # 64
QKV_SIZE = Q_SIZE + 2 * KV_SIZE       # 256
GROUP = N_HEADS // N_KV_HEADS         # 2
INTERMEDIATE = 256
N_LAYERS = 2
EPS = 1e-6
ROPE_THETA = 10000.0
SEQ = 16
SCALE = HEAD_DIM ** -0.5


# ----------------------------- fused stack kernel -----------------------------
def _rms(x, w):
    var = jnp.mean(x * x, axis=-1, keepdims=True)
    return x * jax.lax.rsqrt(var + EPS) * w


def _fused_stack_kernel(h0_ref, cos_ref, sin1_ref, sin2_ref,
                        wqkv_ref, wo_ref, wgu_ref, wdn_ref,
                        in_ln_ref, post_ln_ref, final_ln_ref,
                        o_ref, h_sc, res_sc):
    l = pl.program_id(0)

    @pl.when(l == 0)
    def _():
        h_sc[...] = h0_ref[...]
        res_sc[...] = jnp.zeros_like(res_sc)

    # ---------------- input layernorm (fused residual add) ----------------
    s = h_sc[...] + res_sc[...]
    res_sc[...] = s
    x = _rms(s, in_ln_ref[0])                                   # (T, H) f32

    # ---------------- qkv projection (bf16 MXU) ----------------
    qkv = jnp.dot(x.astype(jnp.bfloat16), wqkv_ref[0],
                  preferred_element_type=jnp.float32)           # (T, 256) f32

    # ---------------- fused RoPE over the q|k segment ----------------
    # rope(x)[j] = x[j]*COS[j] + x[j+16]*SIN1[j] + x[j-16]*SIN2[j]
    # (tables are zero / identity over the V segment so V passes through)
    fwd = pltpu.roll(qkv, QKV_SIZE - HALF, axis=1)   # fwd[j] = qkv[j + HALF]
    bwd = pltpu.roll(qkv, HALF, axis=1)              # bwd[j] = qkv[j - HALF]
    qkv = qkv * cos_ref[...] + fwd * sin1_ref[...] + bwd * sin2_ref[...]

    q = qkv[:, :Q_SIZE]                              # (T, 128)
    k = qkv[:, Q_SIZE:Q_SIZE + KV_SIZE]              # (T, 64)
    v = qkv[:, Q_SIZE + KV_SIZE:]                    # (T, 64)

    # ---------------- causal GQA attention, all heads in one body ----------------
    T = q.shape[0]
    row = jax.lax.broadcasted_iota(jnp.int32, (T, T), 0)
    col = jax.lax.broadcasted_iota(jnp.int32, (T, T), 1)
    causal = col <= row

    outs = []
    for h in range(N_HEADS):                         # static unroll (4 heads)
        kvh = h // GROUP
        qh = q[:, h * HEAD_DIM:(h + 1) * HEAD_DIM].astype(jnp.bfloat16)
        kh = k[:, kvh * HEAD_DIM:(kvh + 1) * HEAD_DIM].astype(jnp.bfloat16)
        vh = v[:, kvh * HEAD_DIM:(kvh + 1) * HEAD_DIM].astype(jnp.bfloat16)
        sc = jax.lax.dot_general(qh, kh, (((1,), (1,)), ((), ())),
                                 preferred_element_type=jnp.float32) * SCALE
        sc = jnp.where(causal, sc, -1e30)
        sc = sc - jnp.max(sc, axis=-1, keepdims=True)
        p = jnp.exp(sc)
        p = p * pl.reciprocal(jnp.sum(p, axis=-1, keepdims=True), approx=True)
        outs.append(jnp.dot(p.astype(jnp.bfloat16), vh,
                            preferred_element_type=jnp.float32))
    o = jnp.concatenate(outs, axis=-1)               # (T, 128) lane-dense f32

    # ---------------- output projection ----------------
    attn = jnp.dot(o.astype(jnp.bfloat16), wo_ref[0],
                   preferred_element_type=jnp.float32)           # (T, H)

    # ---------------- post-attention layernorm ----------------
    s2 = attn + res_sc[...]
    res_sc[...] = s2
    x2 = _rms(s2, post_ln_ref[0])

    # ---------------- MLP: gate/up, SiLU*mul, down ----------------
    gu = jnp.dot(x2.astype(jnp.bfloat16), wgu_ref[0],
                 preferred_element_type=jnp.float32)             # (T, 512)
    g = gu[:, :INTERMEDIATE]
    u = gu[:, INTERMEDIATE:]
    act = g * jax.nn.sigmoid(g) * u                              # f32 on VPU/EUP
    mlp = jnp.dot(act.astype(jnp.bfloat16), wdn_ref[0],
                  preferred_element_type=jnp.float32)            # (T, H)
    h_sc[...] = mlp

    # ---------------- final norm after the last layer ----------------
    @pl.when(l == pl.num_programs(0) - 1)
    def _():
        o_ref[...] = _rms(mlp + res_sc[...], final_ln_ref[...])


def llama_forward(params, input_ids, positions):
    T = input_ids.shape[0]
    # embedding gather (glue; not a matmul hot path)
    h0 = jnp.take(params["embed"], input_ids, axis=0)            # (T, HIDDEN)

    # --- RoPE tables (split-half / neox convention), full qkv width (T, 256) ---
    inv_freq = 1.0 / (ROPE_THETA ** (
        jnp.arange(0, HEAD_DIM, 2, dtype=jnp.float32) / HEAD_DIM))      # (16,)
    freqs = positions.astype(jnp.float32)[:, None] * inv_freq[None, :]  # (T, 16)
    cos, sin = jnp.cos(freqs), jnp.sin(freqs)
    zeros = jnp.zeros_like(sin)
    cos_h = jnp.concatenate([cos, cos], axis=-1)        # (T, 32)
    sin1_h = jnp.concatenate([-sin, zeros], axis=-1)    # multiplies x[j+16]
    sin2_h = jnp.concatenate([zeros, sin], axis=-1)     # multiplies x[j-16]

    def expand(tab, v_fill):
        q_part = jnp.tile(tab, (1, N_HEADS))            # (T, 128)
        k_part = jnp.tile(tab, (1, N_KV_HEADS))         # (T, 64)
        v_part = jnp.full((T, KV_SIZE), v_fill, jnp.float32)
        return jnp.concatenate([q_part, k_part, v_part], axis=-1)   # (T, 256)

    cos_t = expand(cos_h, 1.0)
    sin1_t = expand(sin1_h, 0.0)
    sin2_t = expand(sin2_h, 0.0)

    return pl.pallas_call(
        _fused_stack_kernel,
        out_shape=jax.ShapeDtypeStruct((T, HIDDEN), jnp.float32),
        grid=(N_LAYERS,),
        in_specs=[
            pl.BlockSpec((T, HIDDEN), lambda l: (0, 0)),                  # h0
            pl.BlockSpec((T, QKV_SIZE), lambda l: (0, 0)),                # cos
            pl.BlockSpec((T, QKV_SIZE), lambda l: (0, 0)),                # sin1
            pl.BlockSpec((T, QKV_SIZE), lambda l: (0, 0)),                # sin2
            pl.BlockSpec((1, HIDDEN, QKV_SIZE), lambda l: (l, 0, 0)),     # wqkv
            pl.BlockSpec((1, Q_SIZE, HIDDEN), lambda l: (l, 0, 0)),       # wo
            pl.BlockSpec((1, HIDDEN, 2 * INTERMEDIATE), lambda l: (l, 0, 0)),  # gate_up
            pl.BlockSpec((1, INTERMEDIATE, HIDDEN), lambda l: (l, 0, 0)),      # down
            pl.BlockSpec((1, 1, HIDDEN), lambda l: (l, 0, 0)),            # input_ln
            pl.BlockSpec((1, 1, HIDDEN), lambda l: (l, 0, 0)),            # post_ln
            pl.BlockSpec((1, HIDDEN), lambda l: (0, 0)),                  # final_ln
        ],
        out_specs=pl.BlockSpec((T, HIDDEN), lambda l: (0, 0)),
        scratch_shapes=[pltpu.VMEM((T, HIDDEN), jnp.float32),   # hidden states
                        pltpu.VMEM((T, HIDDEN), jnp.float32)],  # residual stream
        compiler_params=pltpu.CompilerParams(
            dimension_semantics=("arbitrary",)),   # layer loop carries state
    )(h0, cos_t, sin1_t, sin2_t,
      params["wqkv"], params["wo"], params["w_gate_up"], params["w_down"],
      params["input_ln"], params["post_ln"], params["final_ln"])


# ----------------------------- parameter init -----------------------------
def init_params(key):
    def dense(k, shape):
        return (jax.random.normal(k, shape, jnp.float32) * 0.02).astype(jnp.bfloat16)

    keys = jax.random.split(key, 5)
    return {
        "embed": jax.random.normal(keys[0], (VOCAB, HIDDEN), jnp.float32) * 0.02,
        # per-layer weights stacked along a leading layer axis, stored bf16
        # and pre-transposed to (in_features, out_features):
        "wqkv": dense(keys[1], (N_LAYERS, HIDDEN, QKV_SIZE)),
        "wo": dense(keys[2], (N_LAYERS, Q_SIZE, HIDDEN)),
        "w_gate_up": dense(keys[3], (N_LAYERS, HIDDEN, 2 * INTERMEDIATE)),
        "w_down": dense(keys[4], (N_LAYERS, INTERMEDIATE, HIDDEN)),
        "input_ln": jnp.ones((N_LAYERS, 1, HIDDEN), jnp.float32),
        "post_ln": jnp.ones((N_LAYERS, 1, HIDDEN), jnp.float32),
        "final_ln": jnp.ones((1, HIDDEN), jnp.float32),
    }


# ----------------------------- main -----------------------------
if __name__ == "__main__":
    key = jax.random.PRNGKey(0)
    k_param, k_ids = jax.random.split(key)

    params = init_params(k_param)
    input_ids = jax.random.randint(k_ids, (SEQ,), 0, VOCAB, dtype=jnp.int32)
    positions = jnp.arange(SEQ, dtype=jnp.int32)

    out = jax.jit(llama_forward)(params, input_ids, positions)
    out = jax.block_until_ready(out)

    assert out.shape == (SEQ, HIDDEN)
    assert bool(jnp.all(jnp.isfinite(out)))
    print("KERNEL_OK")
</pallas_src>

<mosaic_0001>
module attributes {stable_mosaic.version = 11 : i64} {
  func.func @_fused_stack_kernel(%arg0: i32, %arg1: memref<16x128xf32, #tpu.memory_space<vmem>>, %arg2: memref<16x256xf32, #tpu.memory_space<vmem>>, %arg3: memref<16x256xf32, #tpu.memory_space<vmem>>, %arg4: memref<16x256xf32, #tpu.memory_space<vmem>>, %arg5: memref<1x128x256xbf16, #tpu.memory_space<vmem>>, %arg6: memref<1x128x128xbf16, #tpu.memory_space<vmem>>, %arg7: memref<1x128x512xbf16, #tpu.memory_space<vmem>>, %arg8: memref<1x256x128xbf16, #tpu.memory_space<vmem>>, %arg9: memref<1x1x128xf32, #tpu.memory_space<vmem>>, %arg10: memref<1x1x128xf32, #tpu.memory_space<vmem>>, %arg11: memref<1x128xf32, #tpu.memory_space<vmem>>, %arg12: memref<16x128xf32, #tpu.memory_space<vmem>>, %arg13: memref<16x128xf32, #tpu.memory_space<vmem>>, %arg14: memref<16x128xf32, #tpu.memory_space<vmem>>) attributes {dimension_semantics = [#tpu.dimension_semantics<arbitrary>], iteration_bounds = array<i64: 2>, scalar_prefetch = 0 : i64, scratch_operands = 2 : i64, tpu.core_type = #tpu.core_type<tc>, window_params = [{pipeline_mode = #tpu.pipeline_mode<synchronous>, transform_indices = @transform_0, window_bounds = array<i64: 16, 128>}, {pipeline_mode = #tpu.pipeline_mode<synchronous>, transform_indices = @transform_1, window_bounds = array<i64: 16, 256>}, {pipeline_mode = #tpu.pipeline_mode<synchronous>, transform_indices = @transform_2, window_bounds = array<i64: 16, 256>}, {pipeline_mode = #tpu.pipeline_mode<synchronous>, transform_indices = @transform_3, window_bounds = array<i64: 16, 256>}, {transform_indices = @transform_4, window_bounds = array<i64: 1, 128, 256>}, {transform_indices = @transform_5, window_bounds = array<i64: 1, 128, 128>}, {transform_indices = @transform_6, window_bounds = array<i64: 1, 128, 512>}, {transform_indices = @transform_7, window_bounds = array<i64: 1, 256, 128>}, {transform_indices = @transform_8, window_bounds = array<i64: 1, 1, 128>}, {transform_indices = @transform_9, window_bounds = array<i64: 1, 1, 128>}, {pipeline_mode = #tpu.pipeline_mode<synchronous>, transform_indices = @transform_10, window_bounds = array<i64: 1, 128>}, {pipeline_mode = #tpu.pipeline_mode<synchronous>, transform_indices = @transform_11, window_bounds = array<i64: 16, 128>}]} {
    %c0_i32 = arith.constant 0 : i32
    %0 = arith.cmpi eq, %arg0, %c0_i32 : i32
    %1 = arith.extui %0 : i1 to i32
    %c0_i32_0 = arith.constant 0 : i32
    %2 = arith.cmpi ne, %1, %c0_i32_0 : i32
    scf.if %2 {
      %c0_71 = arith.constant 0 : index
      %c0_72 = arith.constant 0 : index
      %176 = vector.load %arg1[%c0_71, %c0_72] : memref<16x128xf32, #tpu.memory_space<vmem>>, vector<16x128xf32>
      %c0_73 = arith.constant 0 : index
      %c0_74 = arith.constant 0 : index
      %177 = vector.load %arg13[%c0_73, %c0_74] : memref<16x128xf32, #tpu.memory_space<vmem>>, vector<16x128xf32>
      tpu.vector_store %arg13[%c0_73, %c0_74], %176 {strides = array<i32>} : memref<16x128xf32, #tpu.memory_space<vmem>>, vector<16x128xf32>,
      %cst_75 = arith.constant 0.000000e+00 : f32
      %178 = vector.broadcast %cst_75 : f32 to vector<16x128xf32>
      %c0_76 = arith.constant 0 : index
      %c0_77 = arith.constant 0 : index
      %179 = vector.load %arg14[%c0_76, %c0_77] : memref<16x128xf32, #tpu.memory_space<vmem>>, vector<16x128xf32>
      tpu.vector_store %arg14[%c0_76, %c0_77], %178 {strides = array<i32>} : memref<16x128xf32, #tpu.memory_space<vmem>>, vector<16x128xf32>,
    } else {
    }
    %c0 = arith.constant 0 : index
    %c0_1 = arith.constant 0 : index
    %3 = vector.load %arg13[%c0, %c0_1] : memref<16x128xf32, #tpu.memory_space<vmem>>, vector<16x128xf32>
    %c0_2 = arith.constant 0 : index
    %c0_3 = arith.constant 0 : index
    %4 = vector.load %arg14[%c0_2, %c0_3] : memref<16x128xf32, #tpu.memory_space<vmem>>, vector<16x128xf32>
    %5 = arith.addf %3, %4 : vector<16x128xf32>
    %c0_4 = arith.constant 0 : index
    %c0_5 = arith.constant 0 : index
    %6 = vector.load %arg14[%c0_4, %c0_5] : memref<16x128xf32, #tpu.memory_space<vmem>>, vector<16x128xf32>
    tpu.vector_store %arg14[%c0_4, %c0_5], %5 {strides = array<i32>} : memref<16x128xf32, #tpu.memory_space<vmem>>, vector<16x128xf32>,
    %c0_6 = arith.constant 0 : index
    %c0_7 = arith.constant 0 : index
    %c0_8 = arith.constant 0 : index
    %7 = vector.load %arg9[%c0_6, %c0_7, %c0_8] : memref<1x1x128xf32, #tpu.memory_space<vmem>>, vector<1x1x128xf32>
    %8 = vector.shape_cast %7 : vector<1x1x128xf32> to vector<1x128xf32>
    %9 = arith.mulf %5, %5 : vector<16x128xf32>
    %cst = arith.constant dense<0.000000e+00> : vector<16xf32>
    %10 = vector.multi_reduction <add>, %9, %cst [1] : vector<16x128xf32> to vector<16xf32>
    %11 = vector.shape_cast %10 : vector<16xf32> to vector<16x1xf32>
    %cst_9 = arith.constant 1.280000e+02 : f32
    %12 = vector.broadcast %cst_9 : f32 to vector<16x1xf32>
    %13 = arith.divf %11, %12 : vector<16x1xf32>
    %cst_10 = arith.constant 9.99999997E-7 : f32
    %14 = vector.broadcast %cst_10 : f32 to vector<16x1xf32>
    %15 = arith.addf %13, %14 : vector<16x1xf32>
    %16 = math.rsqrt %15 : vector<16x1xf32>
    %17 = vector.broadcast %16 : vector<16x1xf32> to vector<16x128xf32>
    %18 = arith.mulf %5, %17 : vector<16x128xf32>
    %19 = vector.broadcast %8 : vector<1x128xf32> to vector<16x128xf32>
    %20 = arith.mulf %18, %19 : vector<16x128xf32>
    %21 = arith.truncf %20 : vector<16x128xf32> to vector<16x128xbf16>
    %c0_11 = arith.constant 0 : index
    %c0_12 = arith.constant 0 : index
    %c0_13 = arith.constant 0 : index
    %22 = vector.load %arg5[%c0_11, %c0_12, %c0_13] : memref<1x128x256xbf16, #tpu.memory_space<vmem>>, vector<1x128x256xbf16>
    %23 = vector.shape_cast %22 : vector<1x128x256xbf16> to vector<128x256xbf16>
    %cst_14 = arith.constant dense<0.000000e+00> : vector<16x256xf32>
    %24 = tpu.matmul %21, %23, %cst_14 {dimension_numbers = #tpu.dot_dimension_numbers<[1], [0], [0], [1], [0, 0, 1, 1], [], []>} : vector<16x128xbf16>, vector<128x256xbf16>, vector<16x256xf32> -> vector<16x256xf32>
    %c240_i32 = arith.constant 240 : i32
    %25 = tpu.dynamic_rotate %24 by %c240_i32 dim 1 : vector<16x256xf32>, i32 -> vector<16x256xf32>
    %c16_i32 = arith.constant 16 : i32
    %26 = tpu.dynamic_rotate %24 by %c16_i32 dim 1 : vector<16x256xf32>, i32 -> vector<16x256xf32>
    %c0_15 = arith.constant 0 : index
    %c0_16 = arith.constant 0 : index
    %27 = vector.load %arg2[%c0_15, %c0_16] : memref<16x256xf32, #tpu.memory_space<vmem>>, vector<16x256xf32>
    %28 = arith.mulf %24, %27 : vector<16x256xf32>
    %c0_17 = arith.constant 0 : index
    %c0_18 = arith.constant 0 : index
    %29 = vector.load %arg3[%c0_17, %c0_18] : memref<16x256xf32, #tpu.memory_space<vmem>>, vector<16x256xf32>
    %30 = arith.mulf %25, %29 : vector<16x256xf32>
    %31 = arith.addf %28, %30 : vector<16x256xf32>
    %c0_19 = arith.constant 0 : index
    %c0_20 = arith.constant 0 : index
    %32 = vector.load %arg4[%c0_19, %c0_20] : memref<16x256xf32, #tpu.memory_space<vmem>>, vector<16x256xf32>
    %33 = arith.mulf %26, %32 : vector<16x256xf32>
    %34 = arith.addf %31, %33 : vector<16x256xf32>
    %35 = vector.extract_strided_slice %34 {offsets = [0, 0], sizes = [16, 128], strides = [1, 1]} : vector<16x256xf32> to vector<16x128xf32>
    %36 = vector.extract_strided_slice %34 {offsets = [0, 128], sizes = [16, 64], strides = [1, 1]} : vector<16x256xf32> to vector<16x64xf32>
    %37 = vector.extract_strided_slice %34 {offsets = [0, 192], sizes = [16, 64], strides = [1, 1]} : vector<16x256xf32> to vector<16x64xf32>
    %38 = tpu.iota {dimensions = array<i32: 0>} : vector<16x16xi32>
    %39 = tpu.iota {dimensions = array<i32: 1>} : vector<16x16xi32>
    %40 = arith.cmpi sle, %39, %38 : vector<16x16xi32>
    %41 = vector.extract_strided_slice %35 {offsets = [0, 0], sizes = [16, 32], strides = [1, 1]} : vector<16x128xf32> to vector<16x32xf32>
    %42 = arith.truncf %41 : vector<16x32xf32> to vector<16x32xbf16>
    %43 = vector.extract_strided_slice %36 {offsets = [0, 0], sizes = [16, 32], strides = [1, 1]} : vector<16x64xf32> to vector<16x32xf32>
    %44 = arith.truncf %43 : vector<16x32xf32> to vector<16x32xbf16>
    %45 = vector.extract_strided_slice %37 {offsets = [0, 0], sizes = [16, 32], strides = [1, 1]} : vector<16x64xf32> to vector<16x32xf32>
    %46 = arith.truncf %45 : vector<16x32xf32> to vector<16x32xbf16>
    %cst_21 = arith.constant dense<0.000000e+00> : vector<16x16xf32>
    %47 = tpu.matmul %42, %44, %cst_21 {dimension_numbers = #tpu.dot_dimension_numbers<[1], [1], [0], [0], [0, 0, 1, 0], [], []>} : vector<16x32xbf16>, vector<16x32xbf16>, vector<16x16xf32> -> vector<16x16xf32>
    %cst_22 = arith.constant 0.176776692 : f32
    %48 = vector.broadcast %cst_22 : f32 to vector<16x16xf32>
    %49 = arith.mulf %47, %48 : vector<16x16xf32>
    %cst_23 = arith.constant -1.000000e+30 : f32
    %50 = vector.broadcast %cst_23 : f32 to vector<16x16xf32>
    %51 = arith.select %40, %49, %50 : vector<16x16xi1>, vector<16x16xf32>
    %cst_24 = arith.constant dense<0xFF800000> : vector<16xf32>
    %52 = vector.multi_reduction <maximumf>, %51, %cst_24 [1] : vector<16x16xf32> to vector<16xf32>
    %53 = vector.shape_cast %52 : vector<16xf32> to vector<16x1xf32>
    %54 = vector.broadcast %53 : vector<16x1xf32> to vector<16x16xf32>
    %55 = arith.subf %51, %54 : vector<16x16xf32>
    %56 = math.exp %55 : vector<16x16xf32>
    %cst_25 = arith.constant dense<0.000000e+00> : vector<16xf32>
    %57 = vector.multi_reduction <add>, %56, %cst_25 [1] : vector<16x16xf32> to vector<16xf32>
    %58 = vector.shape_cast %57 : vector<16xf32> to vector<16x1xf32>
    %59 = tpu.reciprocal %58 {approx = true} : vector<16x1xf32> -> vector<16x1xf32>
    %60 = vector.broadcast %59 : vector<16x1xf32> to vector<16x16xf32>
    %61 = arith.mulf %56, %60 : vector<16x16xf32>
    %62 = arith.truncf %61 : vector<16x16xf32> to vector<16x16xbf16>
    %cst_26 = arith.constant dense<0.000000e+00> : vector<16x32xf32>
    %63 = tpu.matmul %62, %46, %cst_26 {dimension_numbers = #tpu.dot_dimension_numbers<[1], [0], [0], [1], [0, 0, 1, 1], [], []>} : vector<16x16xbf16>, vector<16x32xbf16>, vector<16x32xf32> -> vector<16x32xf32>
    %64 = vector.extract_strided_slice %35 {offsets = [0, 32], sizes = [16, 32], strides = [1, 1]} : vector<16x128xf32> to vector<16x32xf32>
    %65 = arith.truncf %64 : vector<16x32xf32> to vector<16x32xbf16>
    %66 = vector.extract_strided_slice %36 {offsets = [0, 0], sizes = [16, 32], strides = [1, 1]} : vector<16x64xf32> to vector<16x32xf32>
    %67 = arith.truncf %66 : vector<16x32xf32> to vector<16x32xbf16>
    %68 = vector.extract_strided_slice %37 {offsets = [0, 0], sizes = [16, 32], strides = [1, 1]} : vector<16x64xf32> to vector<16x32xf32>
    %69 = arith.truncf %68 : vector<16x32xf32> to vector<16x32xbf16>
    %cst_27 = arith.constant dense<0.000000e+00> : vector<16x16xf32>
    %70 = tpu.matmul %65, %67, %cst_27 {dimension_numbers = #tpu.dot_dimension_numbers<[1], [1], [0], [0], [0, 0, 1, 0], [], []>} : vector<16x32xbf16>, vector<16x32xbf16>, vector<16x16xf32> -> vector<16x16xf32>
    %cst_28 = arith.constant 0.176776692 : f32
    %71 = vector.broadcast %cst_28 : f32 to vector<16x16xf32>
    %72 = arith.mulf %70, %71 : vector<16x16xf32>
    %cst_29 = arith.constant -1.000000e+30 : f32
    %73 = vector.broadcast %cst_29 : f32 to vector<16x16xf32>
    %74 = arith.select %40, %72, %73 : vector<16x16xi1>, vector<16x16xf32>
    %cst_30 = arith.constant dense<0xFF800000> : vector<16xf32>
    %75 = vector.multi_reduction <maximumf>, %74, %cst_30 [1] : vector<16x16xf32> to vector<16xf32>
    %76 = vector.shape_cast %75 : vector<16xf32> to vector<16x1xf32>
    %77 = vector.broadcast %76 : vector<16x1xf32> to vector<16x16xf32>
    %78 = arith.subf %74, %77 : vector<16x16xf32>
    %79 = math.exp %78 : vector<16x16xf32>
    %cst_31 = arith.constant dense<0.000000e+00> : vector<16xf32>
    %80 = vector.multi_reduction <add>, %79, %cst_31 [1] : vector<16x16xf32> to vector<16xf32>
    %81 = vector.shape_cast %80 : vector<16xf32> to vector<16x1xf32>
    %82 = tpu.reciprocal %81 {approx = true} : vector<16x1xf32> -> vector<16x1xf32>
    %83 = vector.broadcast %82 : vector<16x1xf32> to vector<16x16xf32>
    %84 = arith.mulf %79, %83 : vector<16x16xf32>
    %85 = arith.truncf %84 : vector<16x16xf32> to vector<16x16xbf16>
    %cst_32 = arith.constant dense<0.000000e+00> : vector<16x32xf32>
    %86 = tpu.matmul %85, %69, %cst_32 {dimension_numbers = #tpu.dot_dimension_numbers<[1], [0], [0], [1], [0, 0, 1, 1], [], []>} : vector<16x16xbf16>, vector<16x32xbf16>, vector<16x32xf32> -> vector<16x32xf32>
    %87 = vector.extract_strided_slice %35 {offsets = [0, 64], sizes = [16, 32], strides = [1, 1]} : vector<16x128xf32> to vector<16x32xf32>
    %88 = arith.truncf %87 : vector<16x32xf32> to vector<16x32xbf16>
    %89 = vector.extract_strided_slice %36 {offsets = [0, 32], sizes = [16, 32], strides = [1, 1]} : vector<16x64xf32> to vector<16x32xf32>
    %90 = arith.truncf %89 : vector<16x32xf32> to vector<16x32xbf16>
    %91 = vector.extract_strided_slice %37 {offsets = [0, 32], sizes = [16, 32], strides = [1, 1]} : vector<16x64xf32> to vector<16x32xf32>
    %92 = arith.truncf %91 : vector<16x32xf32> to vector<16x32xbf16>
    %cst_33 = arith.constant dense<0.000000e+00> : vector<16x16xf32>
    %93 = tpu.matmul %88, %90, %cst_33 {dimension_numbers = #tpu.dot_dimension_numbers<[1], [1], [0], [0], [0, 0, 1, 0], [], []>} : vector<16x32xbf16>, vector<16x32xbf16>, vector<16x16xf32> -> vector<16x16xf32>
    %cst_34 = arith.constant 0.176776692 : f32
    %94 = vector.broadcast %cst_34 : f32 to vector<16x16xf32>
    %95 = arith.mulf %93, %94 : vector<16x16xf32>
    %cst_35 = arith.constant -1.000000e+30 : f32
    %96 = vector.broadcast %cst_35 : f32 to vector<16x16xf32>
    %97 = arith.select %40, %95, %96 : vector<16x16xi1>, vector<16x16xf32>
    %cst_36 = arith.constant dense<0xFF800000> : vector<16xf32>
    %98 = vector.multi_reduction <maximumf>, %97, %cst_36 [1] : vector<16x16xf32> to vector<16xf32>
    %99 = vector.shape_cast %98 : vector<16xf32> to vector<16x1xf32>
    %100 = vector.broadcast %99 : vector<16x1xf32> to vector<16x16xf32>
    %101 = arith.subf %97, %100 : vector<16x16xf32>
    %102 = math.exp %101 : vector<16x16xf32>
    %cst_37 = arith.constant dense<0.000000e+00> : vector<16xf32>
    %103 = vector.multi_reduction <add>, %102, %cst_37 [1] : vector<16x16xf32> to vector<16xf32>
    %104 = vector.shape_cast %103 : vector<16xf32> to vector<16x1xf32>
    %105 = tpu.reciprocal %104 {approx = true} : vector<16x1xf32> -> vector<16x1xf32>
    %106 = vector.broadcast %105 : vector<16x1xf32> to vector<16x16xf32>
    %107 = arith.mulf %102, %106 : vector<16x16xf32>
    %108 = arith.truncf %107 : vector<16x16xf32> to vector<16x16xbf16>
    %cst_38 = arith.constant dense<0.000000e+00> : vector<16x32xf32>
    %109 = tpu.matmul %108, %92, %cst_38 {dimension_numbers = #tpu.dot_dimension_numbers<[1], [0], [0], [1], [0, 0, 1, 1], [], []>} : vector<16x16xbf16>, vector<16x32xbf16>, vector<16x32xf32> -> vector<16x32xf32>
    %110 = vector.extract_strided_slice %35 {offsets = [0, 96], sizes = [16, 32], strides = [1, 1]} : vector<16x128xf32> to vector<16x32xf32>
    %111 = arith.truncf %110 : vector<16x32xf32> to vector<16x32xbf16>
    %112 = vector.extract_strided_slice %36 {offsets = [0, 32], sizes = [16, 32], strides = [1, 1]} : vector<16x64xf32> to vector<16x32xf32>
    %113 = arith.truncf %112 : vector<16x32xf32> to vector<16x32xbf16>
    %114 = vector.extract_strided_slice %37 {offsets = [0, 32], sizes = [16, 32], strides = [1, 1]} : vector<16x64xf32> to vector<16x32xf32>
    %115 = arith.truncf %114 : vector<16x32xf32> to vector<16x32xbf16>
    %cst_39 = arith.constant dense<0.000000e+00> : vector<16x16xf32>
    %116 = tpu.matmul %111, %113, %cst_39 {dimension_numbers = #tpu.dot_dimension_numbers<[1], [1], [0], [0], [0, 0, 1, 0], [], []>} : vector<16x32xbf16>, vector<16x32xbf16>, vector<16x16xf32> -> vector<16x16xf32>
    %cst_40 = arith.constant 0.176776692 : f32
    %117 = vector.broadcast %cst_40 : f32 to vector<16x16xf32>
    %118 = arith.mulf %116, %117 : vector<16x16xf32>
    %cst_41 = arith.constant -1.000000e+30 : f32
    %119 = vector.broadcast %cst_41 : f32 to vector<16x16xf32>
    %120 = arith.select %40, %118, %119 : vector<16x16xi1>, vector<16x16xf32>
    %cst_42 = arith.constant dense<0xFF800000> : vector<16xf32>
    %121 = vector.multi_reduction <maximumf>, %120, %cst_42 [1] : vector<16x16xf32> to vector<16xf32>
    %122 = vector.shape_cast %121 : vector<16xf32> to vector<16x1xf32>
    %123 = vector.broadcast %122 : vector<16x1xf32> to vector<16x16xf32>
    %124 = arith.subf %120, %123 : vector<16x16xf32>
    %125 = math.exp %124 : vector<16x16xf32>
    %cst_43 = arith.constant dense<0.000000e+00> : vector<16xf32>
    %126 = vector.multi_reduction <add>, %125, %cst_43 [1] : vector<16x16xf32> to vector<16xf32>
    %127 = vector.shape_cast %126 : vector<16xf32> to vector<16x1xf32>
    %128 = tpu.reciprocal %127 {approx = true} : vector<16x1xf32> -> vector<16x1xf32>
    %129 = vector.broadcast %128 : vector<16x1xf32> to vector<16x16xf32>
    %130 = arith.mulf %125, %129 : vector<16x16xf32>
    %131 = arith.truncf %130 : vector<16x16xf32> to vector<16x16xbf16>
    %cst_44 = arith.constant dense<0.000000e+00> : vector<16x32xf32>
    %132 = tpu.matmul %131, %115, %cst_44 {dimension_numbers = #tpu.dot_dimension_numbers<[1], [0], [0], [1], [0, 0, 1, 1], [], []>} : vector<16x16xbf16>, vector<16x32xbf16>, vector<16x32xf32> -> vector<16x32xf32>
    %133 = tpu.concatenate %63, %86, %109, %132 in 1 : vector<16x32xf32>, vector<16x32xf32>, vector<16x32xf32>, vector<16x32xf32> -> vector<16x128xf32>
    %134 = arith.truncf %133 : vector<16x128xf32> to vector<16x128xbf16>
    %c0_45 = arith.constant 0 : index
    %c0_46 = arith.constant 0 : index
    %c0_47 = arith.constant 0 : index
    %135 = vector.load %arg6[%c0_45, %c0_46, %c0_47] : memref<1x128x128xbf16, #tpu.memory_space<vmem>>, vector<1x128x128xbf16>
    %136 = vector.shape_cast %135 : vector<1x128x128xbf16> to vector<128x128xbf16>
    %cst_48 = arith.constant dense<0.000000e+00> : vector<16x128xf32>
    %137 = tpu.matmul %134, %136, %cst_48 {dimension_numbers = #tpu.dot_dimension_numbers<[1], [0], [0], [1], [0, 0, 1, 1], [], []>} : vector<16x128xbf16>, vector<128x128xbf16>, vector<16x128xf32> -> vector<16x128xf32>
    %c0_49 = arith.constant 0 : index
    %c0_50 = arith.constant 0 : index
    %138 = vector.load %arg14[%c0_49, %c0_50] : memref<16x128xf32, #tpu.memory_space<vmem>>, vector<16x128xf32>
    %139 = arith.addf %137, %138 : vector<16x128xf32>
    %c0_51 = arith.constant 0 : index
    %c0_52 = arith.constant 0 : index
    %140 = vector.load %arg14[%c0_51, %c0_52] : memref<16x128xf32, #tpu.memory_space<vmem>>, vector<16x128xf32>
    tpu.vector_store %arg14[%c0_51, %c0_52], %139 {strides = array<i32>} : memref<16x128xf32, #tpu.memory_space<vmem>>, vector<16x128xf32>,
    %c0_53 = arith.constant 0 : index
    %c0_54 = arith.constant 0 : index
    %c0_55 = arith.constant 0 : index
    %141 = vector.load %arg10[%c0_53, %c0_54, %c0_55] : memref<1x1x128xf32, #tpu.memory_space<vmem>>, vector<1x1x128xf32>
    %142 = vector.shape_cast %141 : vector<1x1x128xf32> to vector<1x128xf32>
    %143 = arith.mulf %139, %139 : vector<16x128xf32>
    %cst_56 = arith.constant dense<0.000000e+00> : vector<16xf32>
    %144 = vector.multi_reduction <add>, %143, %cst_56 [1] : vector<16x128xf32> to vector<16xf32>
    %145 = vector.shape_cast %144 : vector<16xf32> to vector<16x1xf32>
    %cst_57 = arith.constant 1.280000e+02 : f32
    %146 = vector.broadcast %cst_57 : f32 to vector<16x1xf32>
    %147 = arith.divf %145, %146 : vector<16x1xf32>
    %cst_58 = arith.constant 9.99999997E-7 : f32
    %148 = vector.broadcast %cst_58 : f32 to vector<16x1xf32>
    %149 = arith.addf %147, %148 : vector<16x1xf32>
    %150 = math.rsqrt %149 : vector<16x1xf32>
    %151 = vector.broadcast %150 : vector<16x1xf32> to vector<16x128xf32>
    %152 = arith.mulf %139, %151 : vector<16x128xf32>
    %153 = vector.broadcast %142 : vector<1x128xf32> to vector<16x128xf32>
    %154 = arith.mulf %152, %153 : vector<16x128xf32>
    %155 = arith.truncf %154 : vector<16x128xf32> to vector<16x128xbf16>
    %c0_59 = arith.constant 0 : index
    %c0_60 = arith.constant 0 : index
    %c0_61 = arith.constant 0 : index
    %156 = vector.load %arg7[%c0_59, %c0_60, %c0_61] : memref<1x128x512xbf16, #tpu.memory_space<vmem>>, vector<1x128x512xbf16>
    %157 = vector.shape_cast %156 : vector<1x128x512xbf16> to vector<128x512xbf16>
    %cst_62 = arith.constant dense<0.000000e+00> : vector<16x512xf32>
    %158 = tpu.matmul %155, %157, %cst_62 {dimension_numbers = #tpu.dot_dimension_numbers<[1], [0], [0], [1], [0, 0, 1, 1], [], []>} : vector<16x128xbf16>, vector<128x512xbf16>, vector<16x512xf32> -> vector<16x512xf32>
    %159 = vector.extract_strided_slice %158 {offsets = [0, 0], sizes = [16, 256], strides = [1, 1]} : vector<16x512xf32> to vector<16x256xf32>
    %160 = vector.extract_strided_slice %158 {offsets = [0, 256], sizes = [16, 256], strides = [1, 1]} : vector<16x512xf32> to vector<16x256xf32>
    %161 = arith.negf %159 : vector<16x256xf32>
    %162 = math.exp %161 : vector<16x256xf32>
    %cst_63 = arith.constant 1.000000e+00 : f32
    %163 = vector.broadcast %cst_63 : f32 to vector<16x256xf32>
    %164 = arith.addf %163, %162 : vector<16x256xf32>
    %165 = arith.divf %163, %164 : vector<16x256xf32>
    %166 = arith.mulf %159, %165 : vector<16x256xf32>
    %167 = arith.mulf %166, %160 : vector<16x256xf32>
    %168 = arith.truncf %167 : vector<16x256xf32> to vector<16x256xbf16>
    %c0_64 = arith.constant 0 : index
    %c0_65 = arith.constant 0 : index
    %c0_66 = arith.constant 0 : index
    %169 = vector.load %arg8[%c0_64, %c0_65, %c0_66] : memref<1x256x128xbf16, #tpu.memory_space<vmem>>, vector<1x256x128xbf16>
    %170 = vector.shape_cast %169 : vector<1x256x128xbf16> to vector<256x128xbf16>
    %cst_67 = arith.constant dense<0.000000e+00> : vector<16x128xf32>
    %171 = tpu.matmul %168, %170, %cst_67 {dimension_numbers = #tpu.dot_dimension_numbers<[1], [0], [0], [1], [0, 0, 1, 1], [], []>} : vector<16x256xbf16>, vector<256x128xbf16>, vector<16x128xf32> -> vector<16x128xf32>
    %c0_68 = arith.constant 0 : index
    %c0_69 = arith.constant 0 : index
    %172 = vector.load %arg13[%c0_68, %c0_69] : memref<16x128xf32, #tpu.memory_space<vmem>>, vector<16x128xf32>
    tpu.vector_store %arg13[%c0_68, %c0_69], %171 {strides = array<i32>} : memref<16x128xf32, #tpu.memory_space<vmem>>, vector<16x128xf32>,
    %c1_i32 = arith.constant 1 : i32
    %173 = arith.cmpi eq, %arg0, %c1_i32 : i32
    %174 = arith.extui %173 : i1 to i32
    %c0_i32_70 = arith.constant 0 : i32
    %175 = arith.cmpi ne, %174, %c0_i32_70 : i32
    scf.if %175 {
      %c0_71 = arith.constant 0 : index
      %c0_72 = arith.constant 0 : index
      %176 = vector.load %arg14[%c0_71, %c0_72] : memref<16x128xf32, #tpu.memory_space<vmem>>, vector<16x128xf32>
      %177 = arith.addf %171, %176 : vector<16x128xf32>
      %c0_73 = arith.constant 0 : index
      %c0_74 = arith.constant 0 : index
      %178 = vector.load %arg11[%c0_73, %c0_74] : memref<1x128xf32, #tpu.memory_space<vmem>>, vector<1x128xf32>
      %179 = arith.mulf %177, %177 : vector<16x128xf32>
      %cst_75 = arith.constant dense<0.000000e+00> : vector<16xf32>
      %180 = vector.multi_reduction <add>, %179, %cst_75 [1] : vector<16x128xf32> to vector<16xf32>
      %181 = vector.shape_cast %180 : vector<16xf32> to vector<16x1xf32>
      %cst_76 = arith.constant 1.280000e+02 : f32
      %182 = vector.broadcast %cst_76 : f32 to vector<16x1xf32>
      %183 = arith.divf %181, %182 : vector<16x1xf32>
      %cst_77 = arith.constant 9.99999997E-7 : f32
      %184 = vector.broadcast %cst_77 : f32 to vector<16x1xf32>
      %185 = arith.addf %183, %184 : vector<16x1xf32>
      %186 = math.rsqrt %185 : vector<16x1xf32>
      %187 = vector.broadcast %186 : vector<16x1xf32> to vector<16x128xf32>
      %188 = arith.mulf %177, %187 : vector<16x128xf32>
      %189 = vector.broadcast %178 : vector<1x128xf32> to vector<16x128xf32>
      %190 = arith.mulf %188, %189 : vector<16x128xf32>
      %c0_78 = arith.constant 0 : index
      %c0_79 = arith.constant 0 : index
      %191 = vector.load %arg12[%c0_78, %c0_79] : memref<16x128xf32, #tpu.memory_space<vmem>>, vector<16x128xf32>
      tpu.vector_store %arg12[%c0_78, %c0_79], %190 {strides = array<i32>} : memref<16x128xf32, #tpu.memory_space<vmem>>, vector<16x128xf32>,
    } else {
    }
    return
  }
  func.func @transform_0(%arg0: i32) -> (i32, i32) {
    %c0_i32 = arith.constant 0 : i32
    %c0_i32_0 = arith.constant 0 : i32
    %c0_i32_1 = arith.constant 0 : i32
    return %c0_i32, %c0_i32_0 : i32, i32
  }
  func.func @transform_1(%arg0: i32) -> (i32, i32) {
    %c0_i32 = arith.constant 0 : i32
    %c0_i32_0 = arith.constant 0 : i32
    %c0_i32_1 = arith.constant 0 : i32
    return %c0_i32, %c0_i32_0 : i32, i32
  }
  func.func @transform_2(%arg0: i32) -> (i32, i32) {
    %c0_i32 = arith.constant 0 : i32
    %c0_i32_0 = arith.constant 0 : i32
    %c0_i32_1 = arith.constant 0 : i32
    return %c0_i32, %c0_i32_0 : i32, i32
  }
  func.func @transform_3(%arg0: i32) -> (i32, i32) {
    %c0_i32 = arith.constant 0 : i32
    %c0_i32_0 = arith.constant 0 : i32
    %c0_i32_1 = arith.constant 0 : i32
    return %c0_i32, %c0_i32_0 : i32, i32
  }
  func.func @transform_4(%arg0: i32) -> (i32, i32, i32) {
    %c0_i32 = arith.constant 0 : i32
    %c0_i32_0 = arith.constant 0 : i32
    %c0_i32_1 = arith.constant 0 : i32
    return %arg0, %c0_i32, %c0_i32_0 : i32, i32, i32
  }
  func.func @transform_5(%arg0: i32) -> (i32, i32, i32) {
    %c0_i32 = arith.constant 0 : i32
    %c0_i32_0 = arith.constant 0 : i32
    %c0_i32_1 = arith.constant 0 : i32
    return %arg0, %c0_i32, %c0_i32_0 : i32, i32, i32
  }
  func.func @transform_6(%arg0: i32) -> (i32, i32, i32) {
    %c0_i32 = arith.constant 0 : i32
    %c0_i32_0 = arith.constant 0 : i32
    %c0_i32_1 = arith.constant 0 : i32
    return %arg0, %c0_i32, %c0_i32_0 : i32, i32, i32
  }
  func.func @transform_7(%arg0: i32) -> (i32, i32, i32) {
    %c0_i32 = arith.constant 0 : i32
    %c0_i32_0 = arith.constant 0 : i32
    %c0_i32_1 = arith.constant 0 : i32
    return %arg0, %c0_i32, %c0_i32_0 : i32, i32, i32
  }
  func.func @transform_8(%arg0: i32) -> (i32, i32, i32) {
    %c0_i32 = arith.constant 0 : i32
    %c0_i32_0 = arith.constant 0 : i32
    %c0_i32_1 = arith.constant 0 : i32
    return %arg0, %c0_i32, %c0_i32_0 : i32, i32, i32
  }
  func.func @transform_9(%arg0: i32) -> (i32, i32, i32) {
    %c0_i32 = arith.constant 0 : i32
    %c0_i32_0 = arith.constant 0 : i32
    %c0_i32_1 = arith.constant 0 : i32
    return %arg0, %c0_i32, %c0_i32_0 : i32, i32, i32
  }
  func.func @transform_10(%arg0: i32) -> (i32, i32) {
    %c0_i32 = arith.constant 0 : i32
    %c0_i32_0 = arith.constant 0 : i32
    %c0_i32_1 = arith.constant 0 : i32
    return %c0_i32, %c0_i32_0 : i32, i32
  }
  func.func @transform_11(%arg0: i32) -> (i32, i32) {
    %c0_i32 = arith.constant 0 : i32
    %c0_i32_0 = arith.constant 0 : i32
    %c0_i32_1 = arith.constant 0 : i32
    return %c0_i32, %c0_i32_0 : i32, i32
  }
}

</mosaic_0001>

<bundles_post_ra>
// kernel: tile.44
= control target key start
LH: loop header
LB: loop body
LE: loop exit
PB: predicated region body
PF: predicated region fallthrough
CT: control target
= control target key end

     0   :  { %vm68_vm0 = vcmask 1047556   ;;  %s167_s9 = smov 64   ;;  %s168_s10 = smov 32   ;;  %vm70_vm1 = vcmask 261120   ;;  %vm89_vm2 = vcmask 1048320   ;;  %vm110_vm3 = vcmask 785920   ;;  %s259_s0 = inlined_call_operand.vmem [shape: f32[16,4,32], index: 0, kind: input, shape index: {}]   ;;  %s260_s1 = inlined_call_operand.vmem [shape: f32[16,128], index: 1, kind: output, shape index: {}]  }
   0x1   :  { %v152_v0 = vld [vmem:[%s259_s0 + $0x1c] sm:$0xf]  ;;  %v153_v1 = vld [vmem:[%s259_s0 + $0x18] sm:$0xf]  ;;  %v154_v2 = vld [vmem:[%s259_s0 + $0x14] sm:$0xf] }
   0x2   :  { %39 = vst [vmem:[#allocation0 + $0x38] sm:$0xf] %v152_v0  ;;  %v155_v3 = vld [vmem:[%s259_s0 + $0x10] sm:$0xf]  ;;  %v156_v4 = vld [vmem:[%s259_s0 + $0xc] sm:$0xf] }
   0x3   :  { %43 = vst [vmem:[#allocation0 + $0x30] sm:$0xf] %v153_v1  ;;  %v157_v5 = vld [vmem:[%s259_s0 + $0x8] sm:$0xf]  ;;  %v158_v6 = vld [vmem:[%s259_s0 + $0x4] sm:$0xf] }
   0x4   :  { %47 = vst [vmem:[#allocation0 + $0x28] sm:$0xf] %v154_v2  ;;  %v64_v7 = vld [vmem:[%s259_s0] sm:$0xf]  ;;  %v144_v8 = vld [vmem:[%s259_s0 + $0x3c] sm:$0xf] }
   0x5   :  { %51 = vst [vmem:[#allocation0 + $0x20] sm:$0xf] %v155_v3  ;;  %v145_v9 = vld [vmem:[%s259_s0 + $0x38] sm:$0xf]  ;;  %v146_v10 = vld [vmem:[%s259_s0 + $0x34] sm:$0xf] }
   0x6   :  { %55 = vst [vmem:[#allocation0 + $0x18] sm:$0xf] %v156_v4  ;;  %v147_v11 = vld [vmem:[%s259_s0 + $0x30] sm:$0xf]  ;;  %v148_v12 = vld [vmem:[%s259_s0 + $0x2c] sm:$0xf] }
   0x7   :  { %59 = vst [vmem:[#allocation0 + $0x10] sm:$0xf] %v157_v5  ;;  %v149_v13 = vld [vmem:[%s259_s0 + $0x28] sm:$0xf]  ;;  %v150_v15 = vld [vmem:[%s259_s0 + $0x24] sm:$0xf] }
   0x8   :  { %63 = vst [vmem:[#allocation0 + $0x8] sm:$0xf] %v158_v6  ;;  %v151_v17 = vld [vmem:[%s259_s0 + $0x20] sm:$0xf]  ;;  %s166_s0 = smov 96   ;;  %vm131_vm4 = vcmask 523520  }
   0x9   :  { %65 = vst [vmem:[#allocation0] sm:$0xf] %v64_v7 }
   0xa   :  { %7 = vst [vmem:[#allocation0 + $0x78] sm:$0xf] %v144_v8 }
   0xb   :  { %11 = vst [vmem:[#allocation0 + $0x70] sm:$0xf] %v145_v9 }
   0xc   :  { %v84_v14 = vld [vmem:[#allocation0 + $0x3] ss:$8 sm:$0xf0]   ;;  %15 = vst [vmem:[#allocation0 + $0x68] sm:$0xf] %v146_v10 }
   0xd   :  { %v105_v16 = vld [vmem:[#allocation0 + $0x2] ss:$8 sm:$0xf0]   ;;  %19 = vst [vmem:[#allocation0 + $0x60] sm:$0xf] %v147_v11 }
   0xe   :  { %23 = vst [vmem:[#allocation0 + $0x58] sm:$0xf] %v148_v12  ;;  %v126_v18 = vld [vmem:[#allocation0 + $0x1] ss:$8 sm:$0xf0]  }
   0xf   :  { %27 = vst [vmem:[#allocation0 + $0x50] sm:$0xf] %v149_v13  ;;  %v67_v35 = vld [vmem:[#allocation0] ss:$8 sm:$0xf0]  }
  0x10   :  { %v82_v19 = vld [vmem:[#allocation0 + $0x3] ss:$8 sm:$0xf]   ;;  %v103_v20 = vld [vmem:[#allocation0 + $0x2] ss:$8 sm:$0xf]  }
  0x11   :  { %v86_v21 = vsel %vm68_vm0, %v84_v14, %v82_v19  ;;  %v107_v22 = vsel %vm68_vm0, %v105_v16, %v103_v20  ;;  %v124_v23 = vld [vmem:[#allocation0 + $0x1] ss:$8 sm:$0xf]   ;;  %31 = vst [vmem:[#allocation0 + $0x48] sm:$0xf] %v150_v15 }
  0x12   :  { %87 = vrot.lane.b32.xlu0 %v86_v21, %s166_s0  ;;  %108 = vrot.lane.b32.xlu1 %v107_v22, %s167_s9  ;;  %v128_v24 = vsel %vm68_vm0, %v126_v18, %v124_v23  ;;  %35 = vst [vmem:[#allocation0 + $0x40] sm:$0xf] %v151_v17  ;;  %v66_v34 = vld [vmem:[#allocation0] ss:$8 sm:$0xf]  }
  0x13   :  { %129 = vrot.lane.b32.xlu2 %v128_v24, %s168_s10  ;;  %v69_v36 = vsel %vm68_vm0, %v67_v35, %v66_v34 }
  0x14   :  { %v94_v25 = vld [vmem:[#allocation0 + $0x43] ss:$8 sm:$0xf0]   ;;  %v115_v26 = vld [vmem:[#allocation0 + $0x42] ss:$8 sm:$0xf0]  }
  0x15   :  { %v136_v27 = vld [vmem:[#allocation0 + $0x41] ss:$8 sm:$0xf0]   ;;  %71 = vst.msk [vmem:[%s260_s1] sm:$0xff] %vm70_vm1, %v69_v36  }
  0x16   :  { %v75_v38 = vld [vmem:[#allocation0 + $0x40] ss:$8 sm:$0xf0]  }
  0x19   :  { %v92_v28 = vld [vmem:[#allocation0 + $0x43] ss:$8 sm:$0xf]   ;;  %v113_v29 = vld [vmem:[#allocation0 + $0x42] ss:$8 sm:$0xf]  }
  0x1a   :  { %v96_v30 = vsel %vm68_vm0, %v94_v25, %v92_v28  ;;  %v117_v31 = vsel %vm68_vm0, %v115_v26, %v113_v29  ;;  %v134_v32 = vld [vmem:[#allocation0 + $0x41] ss:$8 sm:$0xf]   ;;  %v73_v37 = vld [vmem:[#allocation0 + $0x40] ss:$8 sm:$0xf]  }
  0x1b   :  { %97 = vrot.lane.b32.xlu0 %v96_v30, %s166_s0  ;;  %118 = vrot.lane.b32.xlu1 %v117_v31, %s167_s9  ;;  %v138_v33 = vsel %vm68_vm0, %v136_v27, %v134_v32  ;;  %v77_v40 = vsel %vm68_vm0, %v75_v38, %v73_v37 }
  0x1c   :  { %139 = vrot.lane.b32.xlu2 %v138_v33, %s168_s10  ;;  %159 = vst.msk [vmem:[%s260_s1 + $0x8] sm:$0xff] %vm70_vm1, %v77_v40  }
  0x6d   :  { %v130_v39 = vpop.permute.xlu2 %129  }
  0x76   :  { %v140_v41 = vpop.permute.xlu2 %139  }
  0x84   :  { %v88_v42 = vpop.permute.xlu0 %87   ;;  %v109_v43 = vpop.permute.xlu1 %108  }
  0x85   :  { %90 = vst.msk [vmem:[%s260_s1] sm:$0xff] %vm89_vm2, %v88_v42  }
  0x86   :  { %111 = vst.msk [vmem:[%s260_s1] sm:$0xff] %vm110_vm3, %v109_v43  }
  0x87   :  { %132 = vst.msk [vmem:[%s260_s1] sm:$0xff] %vm131_vm4, %v130_v39  }
  0x8d   :  { %v98_v44 = vpop.permute.xlu0 %97   ;;  %v119_v45 = vpop.permute.xlu1 %118  }
  0x8e   :  { %160 = vst.msk [vmem:[%s260_s1 + $0x8] sm:$0xff] %vm89_vm2, %v98_v44  }
  0x8f   :  { %161 = vst.msk [vmem:[%s260_s1 + $0x8] sm:$0xff] %vm110_vm3, %v119_v45  }
  0x90   :  { %162 = vst.msk [vmem:[%s260_s1 + $0x8] sm:$0xff] %vm131_vm4, %v140_v41  }

// kernel: tile.49
= control target key start
LH: loop header
LB: loop body
LE: loop exit
PB: predicated region body
PF: predicated region fallthrough
CT: control target
= control target key end

     0   :  { %vm68_vm0 = vcmask 1047556   ;;  %vm70_vm1 = vcmask 261120   ;;  %vm89_vm2 = vcmask 523520   ;;  %s195_s0 = inlined_call_operand.vmem [shape: f32[16,2,32], index: 0, kind: input, shape index: {}]   ;;  %s196_s1 = inlined_call_operand.vmem [shape: f32[16,64], index: 1, kind: output, shape index: {}]  }
   0x1   :  { %v110_v0 = vld [vmem:[%s195_s0 + $0xe] sm:$0x3]  ;;  %v111_v1 = vld [vmem:[%s195_s0 + $0xc] sm:$0x3]  ;;  %v112_v2 = vld [vmem:[%s195_s0 + $0xa] sm:$0x3] }
   0x2   :  { %39 = vst [vmem:[#allocation0 + $0x38] sm:$0x3] %v110_v0  ;;  %v113_v3 = vld [vmem:[%s195_s0 + $0x8] sm:$0x3]  ;;  %v114_v4 = vld [vmem:[%s195_s0 + $0x6] sm:$0x3] }
   0x3   :  { %43 = vst [vmem:[#allocation0 + $0x30] sm:$0x3] %v111_v1  ;;  %v115_v5 = vld [vmem:[%s195_s0 + $0x4] sm:$0x3]  ;;  %v116_v6 = vld [vmem:[%s195_s0 + $0x2] sm:$0x3] }
   0x4   :  { %47 = vst [vmem:[#allocation0 + $0x28] sm:$0x3] %v112_v2  ;;  %v64_v7 = vld [vmem:[%s195_s0] sm:$0x3]  ;;  %v102_v8 = vld [vmem:[%s195_s0 + $0x1e] sm:$0x3] }
   0x5   :  { %51 = vst [vmem:[#allocation0 + $0x20] sm:$0x3] %v113_v3  ;;  %v103_v9 = vld [vmem:[%s195_s0 + $0x1c] sm:$0x3]  ;;  %v104_v10 = vld [vmem:[%s195_s0 + $0x1a] sm:$0x3] }
   0x6   :  { %55 = vst [vmem:[#allocation0 + $0x18] sm:$0x3] %v114_v4  ;;  %v105_v11 = vld [vmem:[%s195_s0 + $0x18] sm:$0x3]  ;;  %v106_v12 = vld [vmem:[%s195_s0 + $0x16] sm:$0x3] }
   0x7   :  { %59 = vst [vmem:[#allocation0 + $0x10] sm:$0x3] %v115_v5  ;;  %v107_v13 = vld [vmem:[%s195_s0 + $0x14] sm:$0x3]  ;;  %v108_v14 = vld [vmem:[%s195_s0 + $0x12] sm:$0x3] }
   0x8   :  { %63 = vst [vmem:[#allocation0 + $0x8] sm:$0x3] %v116_v6  ;;  %v109_v15 = vld [vmem:[%s195_s0 + $0x10] sm:$0x3]  ;;  %s120_s0 = smov 32  }
   0x9   :  { %65 = vst [vmem:[#allocation0] sm:$0x3] %v64_v7 }
   0xa   :  { %7 = vst [vmem:[#allocation0 + $0x78] sm:$0x3] %v102_v8 }
   0xb   :  { %11 = vst [vmem:[#allocation0 + $0x70] sm:$0x3] %v103_v9 }
   0xc   :  { %15 = vst [vmem:[#allocation0 + $0x68] sm:$0x3] %v104_v10  ;;  %v84_v16 = vld [vmem:[#allocation0 + $0x1] ss:$8 sm:$0xf0]  }
   0xd   :  { %19 = vst [vmem:[#allocation0 + $0x60] sm:$0x3] %v105_v11  ;;  %v67_v23 = vld [vmem:[#allocation0] ss:$8 sm:$0xf0]  }
   0xe   :  { %23 = vst [vmem:[#allocation0 + $0x58] sm:$0x3] %v106_v12 }
   0xf   :  { %27 = vst [vmem:[#allocation0 + $0x50] sm:$0x3] %v107_v13 }
  0x10   :  { %v82_v17 = vld [vmem:[#allocation0 + $0x1] ss:$8 sm:$0xf]   ;;  %31 = vst [vmem:[#allocation0 + $0x48] sm:$0x3] %v108_v14 }
  0x11   :  { %v86_v18 = vsel %vm68_vm0, %v84_v16, %v82_v17  ;;  %35 = vst [vmem:[#allocation0 + $0x40] sm:$0x3] %v109_v15  ;;  %v66_v22 = vld [vmem:[#allocation0] ss:$8 sm:$0xf]  }
  0x12   :  { %87 = vrot.lane.b32.xlu0 %v86_v18, %s120_s0  ;;  %v69_v24 = vsel %vm68_vm0, %v67_v23, %v66_v22 }
  0x13   :  { %71 = vst.msk [vmem:[%s196_s1] sm:$0xff] %vm70_vm1, %v69_v24  }
  0x14   :  { %v94_v19 = vld [vmem:[#allocation0 + $0x41] ss:$8 sm:$0xf0]   ;;  %v75_v26 = vld [vmem:[#allocation0 + $0x40] ss:$8 sm:$0xf0]  }
  0x18   :  { %v92_v20 = vld [vmem:[#allocation0 + $0x41] ss:$8 sm:$0xf]   ;;  %v73_v25 = vld [vmem:[#allocation0 + $0x40] ss:$8 sm:$0xf]  }
  0x19   :  { %v96_v21 = vsel %vm68_vm0, %v94_v19, %v92_v20  ;;  %v77_v27 = vsel %vm68_vm0, %v75_v26, %v73_v25 }
  0x1a   :  { %97 = vrot.lane.b32.xlu0 %v96_v21, %s120_s0  ;;  %117 = vst.msk [vmem:[%s196_s1 + $0x8] sm:$0xff] %vm70_vm1, %v77_v27  }
  0x84   :  { %v88_v28 = vpop.permute.xlu0 %87  }
  0x85   :  { %90 = vst.msk [vmem:[%s196_s1] sm:$0xff] %vm89_vm2, %v88_v28  }
  0x8c   :  { %v98_v29 = vpop.permute.xlu0 %97  }
  0x8d   :  { %118 = vst.msk [vmem:[%s196_s1 + $0x8] sm:$0xff] %vm89_vm2, %v98_v29  }

// kernel: llama_forward.1
= control target key start
LH: loop header
LB: loop body
LE: loop exit
PB: predicated region body
PF: predicated region fallthrough
CT: control target
= control target key end

     0   :  { %s2788_s0 = inlined_call_operand.vmem [shape: f32[16,128], index: 0, kind: input, shape index: {}]   ;;  %s2789_s1 = inlined_call_operand.vmem [shape: f32[16,256], index: 1, kind: input, shape index: {}]   ;;  %s2790_s2 = inlined_call_operand.vmem [shape: f32[16,256], index: 2, kind: input, shape index: {}]   ;;  %s2791_s3 = inlined_call_operand.vmem [shape: f32[16,256], index: 3, kind: input, shape index: {}]   ;;  %s2792_s4 = inlined_call_operand.vmem [shape: bf16[2,128,256], index: 4, kind: input, shape index: {}]   ;;  %s2793_s5 = inlined_call_operand.vmem [shape: bf16[2,128,128], index: 5, kind: input, shape index: {}]   ;;  %s2794_s6 = inlined_call_operand.vmem [shape: bf16[2,128,512], index: 6, kind: input, shape index: {}]   ;;  %s2795_s7 = inlined_call_operand.vmem [shape: bf16[2,256,128], index: 7, kind: input, shape index: {}]   ;;  %s2796_s8 = inlined_call_operand.vmem [shape: f32[2,1,128], index: 8, kind: input, shape index: {}]   ;;  %s2797_s9 = inlined_call_operand.vmem [shape: f32[2,1,128], index: 9, kind: input, shape index: {}]   ;;  %s2798_s10 = inlined_call_operand.vmem [shape: f32[1,128], index: 10, kind: input, shape index: {}]   ;;  %s2799_s11 = inlined_call_operand.hbm [shape: f32[16,128], index: 11, kind: output, shape index: {}]  }
   0x1   :  { %2801 = sst [smem:[#allocation8_spill]] %s2792_s4 }
   0x2   :  { %16 = vsyncpa [#allocation5], 0  ;;  %s2391_s17 = smov 0  }
   0x3 LB: > { %2802 = sst [smem:[#allocation7_spill]] %s2319_s17  ;;  %s2397_s18 = sadd.s32 4294967295, %s2319_s17   ;;  %s2319_s17 = sphi %s2391_s17, %s22_s17  }
   0x4   : > { %p1786_p0 = scmp.ge.s32.totalorder %s2319_s17, 1  ;;  %p379_p1 = scmp.lt.s32.totalorder %s2319_s17, 3 }
   0x6   : > { %p380_p2 = pnand %p1786_p0, %p379_p1 }
   0x7   : > { %p435_p3 = scmp.lt.s32.totalorder (!%p380_p2), %s2397_s18, 1  ;;  %s2803_s4 = sld [smem:[#allocation8_spill]] (!%p380_p2) }
   0x8   : > { %383 = sbr.rel (%p380_p2) target bundleno = 2349 (0x92d), region = 64  ;;  %p1795_p4 = scmp.ne.s32.totalorder (!%p380_p2), %s2397_s18, 0 }
   0xd   : > { %s2403_s19 = scalar_select %p435_p3, %s2397_s18, 1 }
   0xf   : > { %s2101_s20 = sshll.u32 %s2403_s19, 7  ;;  %s2102_s21 = sshll.u32 %s2403_s19, 6 }
  0x10   : > { %s2410_s24 = scalar_lea.vmem %s2803_s4, %s2101_s20  ;;  %s2415_s27 = scalar_lea.vmem %s2793_s5, %s2102_s21 }
  0x11   : > { %s2103_s28 = sshll.u32 %s2403_s19, 8  ;;  %s2421_s12 = scalar_lea.vmem %s2795_s7, %s2101_s20 }
  0x12   : > { %s2426_s15 = scalar_lea.vmem %s2794_s6, %s2103_s28  ;;  %s457_s23 = scalar_lea.vmem %s2796_s8, %s2403_s19 }
  0x13   : > { %s460_s21 = scalar_lea.vmem %s2797_s9, %s2403_s19  ;;  %465 = sbr.rel (%p1795_p4) target bundleno = 29 (0x1d), region = 68 }
  0x18   : > { %v466_v0 = vld [vmem:[%s2788_s0] sm:$0xff]  ;;  %v467_v1 = vld [vmem:[%s2788_s0 + $0x8] sm:$0xff]  ;;  %v2321_v2 = vmov 0.0  }
  0x19   : > { %468 = vst [vmem:[#allocation2] sm:$0xff] %v466_v0 }
  0x1a   : > { %469 = vst [vmem:[#allocation2 + $0x8] sm:$0xff] %v467_v1 }
  0x1b   : > { %470 = vst [vmem:[#allocation3 + $0x8] sm:$0xff] %v2321_v2 }
  0x1c   : > { %471 = vst [vmem:[#allocation3] sm:$0xff] %v2321_v2 }
  0x1d PF: > { %v1854_v11 = vld [vmem:[%s2410_s24 + $0x70] sm:$0xf]  ;;  %v2120_v12 = vld [vmem:[%s2410_s24 + $0x74] sm:$0xf0]  ;;  %v2119_v13 = vld [vmem:[%s2410_s24 + $0x74] sm:$0xf] }
  0x1e   : > { %v1855_v14 = vor.u32 %v2120_v12, %v1854_v11  ;;  %v1856_v15 = vld [vmem:[%s2410_s24 + $0x78] sm:$0xf0]  ;;  %v2322_v16 = vmov 128.0   ;;  %v1846_v18 = vld [vmem:[%s2410_s24 + $0x60] sm:$0xf]  ;;  %s2324_s28 = smov 16  }
  0x1f   : > { %2218 = vrcp.f32 %v2322_v16  ;;  %v1859_v17 = vor.u32 %v2119_v13, %v1856_v15  ;;  %v2118_v19 = vld [vmem:[%s2410_s24 + $0x64] sm:$0xf0]  ;;  %v2117_v20 = vld [vmem:[%s2410_s24 + $0x64] sm:$0xf]  ;;  %v1848_v22 = vld [vmem:[%s2410_s24 + $0x68] sm:$0xf0] }
  0x20   : > { %v472_v3 = vld [vmem:[#allocation2] sm:$0xff]  ;;  %622 = vmatpush.bf16.msra.mxu0 %v1855_v14  ;;  %v1847_v21 = vor.u32 %v2118_v19, %v1846_v18  ;;  %v1851_v23 = vor.u32 %v2117_v20, %v1848_v22  ;;  %v1838_v25 = vld [vmem:[%s2410_s24 + $0x50] sm:$0xf]  ;;  %v2116_v26 = vld [vmem:[%s2410_s24 + $0x54] sm:$0xf0]  ;;  %vm717_vm9 = vcmask 261120  }
  0x21   : > { %v473_v6 = vld [vmem:[#allocation2 + $0x8] sm:$0xff]  ;;  %636 = vmatpush.bf16.msra.mxu1 %v1859_v17  ;;  %v2115_v27 = vld [vmem:[%s2410_s24 + $0x54] sm:$0xf]  ;;  %v1839_v28 = vor.u32 %v2116_v26, %v1838_v25  ;;  %v1840_v29 = vld [vmem:[%s2410_s24 + $0x58] sm:$0xf0]  ;;  %vm742_vm11 = vcmask 130048  }
  0x22   : > { %v474_v4 = vld [vmem:[#allocation3 + $0x8] sm:$0xff]  ;;  %v1843_v30 = vor.u32 %v2115_v27, %v1840_v29  ;;  %v1830_v32 = vld [vmem:[%s2410_s24 + $0x40] sm:$0xf]  ;;  %v2114_v33 = vld [vmem:[%s2410_s24 + $0x44] sm:$0xf0]  ;;  %s2325_s4 = smov 96  }
  0x23   : > { %v2443_v5 = vadd.f32 %v474_v4, %v472_v3  ;;  %v475_v7 = vld [vmem:[#allocation3] sm:$0xff]  ;;  %v2113_v34 = vld [vmem:[%s2410_s24 + $0x44] sm:$0xf]  ;;  %v1831_v35 = vor.u32 %v2114_v33, %v1830_v32  ;;  %v1832_v36 = vld [vmem:[%s2410_s24 + $0x48] sm:$0xf0]  ;;  %s2326_s17 = smov 32  }
  0x24   : > { %v2447_v9 = vadd.f32 %v475_v7, %v473_v6  ;;  %623 = vmatpush.bf16.msra.mxu0 %v1847_v21  ;;  %v1835_v37 = vor.u32 %v2113_v34, %v1832_v36  ;;  %v1822_v39 = vld [vmem:[%s2410_s24 + $0x30] sm:$0xf]  ;;  %v2112_v40 = vld [vmem:[%s2410_s24 + $0x34] sm:$0xf0]  ;;  %v2111_v41 = vld [vmem:[%s2410_s24 + $0x34] sm:$0xf]  ;;  %v658_v36 = vlaneseq }
  0x25   : > { %v481_v8 = vmul.f32 %v2443_v5, %v2443_v5  ;;  %v2219_v24 = vpop.eup %2218  ;;  %637 = vmatpush.bf16.msra.mxu1 %v1851_v23  ;;  %v1823_v42 = vor.u32 %v2112_v40, %v1822_v39  ;;  %v1824_v43 = vld [vmem:[%s2410_s24 + $0x38] sm:$0xf0]  ;;  %v1814_v46 = vld [vmem:[%s2410_s24 + $0x20] sm:$0xf]  ;;  %v2110_v47 = vld [vmem:[%s2410_s24 + $0x24] sm:$0xf0] }
  0x26   : > { %v482_v10 = vmul.f32 %v2447_v9, %v2447_v9  ;;  %v488_v31 = vmul.f32 128.0, %v2219_v24  ;;  %v1827_v44 = vor.u32 %v2111_v41, %v1824_v43  ;;  %v2109_v48 = vld [vmem:[%s2410_s24 + $0x24] sm:$0xf]  ;;  %v1815_v49 = vor.u32 %v2110_v47, %v1814_v46  ;;  %v1816_v50 = vld [vmem:[%s2410_s24 + $0x28] sm:$0xf0]  ;;  %p2096_p5 = scmp.ne.s32.totalorder %s2397_s18, 1 }
  0x27   : > { %483 = vadd.xlane.f32.xlu0 %v481_v8  ;;  %v1819_v51 = vor.u32 %v2109_v48, %v1816_v50  ;;  %vm492_vm0 = vweird.f32 %v2219_v24  ;;  %v1806_v53 = vld [vmem:[%s2410_s24 + $0x10] sm:$0xf]  ;;  %v2108_v54 = vld [vmem:[%s2410_s24 + $0x14] sm:$0xf0]  ;;  %v2107_v55 = vld [vmem:[%s2410_s24 + $0x14] sm:$0xf] }
  0x28   : > { %624 = vmatpush.bf16.msra.mxu0 %v1839_v28  ;;  %v489_v38 = vsub.f32 1.0, %v488_v31  ;;  %v1807_v56 = vor.u32 %v2108_v54, %v1806_v53  ;;  %v1808_v57 = vld [vmem:[%s2410_s24 + $0x18] sm:$0xf0]  ;;  %v1798_v58 = vld [vmem:[%s2410_s24] sm:$0xf]  ;;  %v687_v41 = vld [vmem:[%s2790_s2 + $0x8] sm:$0xff] }
  0x29   : > { %638 = vmatpush.bf16.msra.mxu1 %v1843_v30  ;;  %v2106_v59 = vld [vmem:[%s2410_s24 + $0x4] sm:$0xf0]  ;;  %v1811_v60 = vor.u32 %v2107_v55, %v1808_v57  ;;  %v2105_v61 = vld [vmem:[%s2410_s24 + $0x4] sm:$0xf]  ;;  %v1800_v62 = vld [vmem:[%s2410_s24 + $0x8] sm:$0xf0] }
  0x2a   : > { %v490_v45 = vmul.f32 %v2219_v24, %v489_v38  ;;  %v1799_v0 = vor.u32 %v2106_v59, %v1798_v58  ;;  %v1803_v1 = vor.u32 %v2105_v61, %v1800_v62  ;;  %s2323_s24 = smov 112   ;;  %v2494_v38 = vand.u32 127, %v658_v36  ;;  %v679_v43 = vld [vmem:[%s2789_s1 + $0x8] sm:$0xff]  ;;  %v681_v48 = vld [vmem:[%s2789_s1 + $0x18] sm:$0xff]  ;;  %v686_v58 = vld [vmem:[%s2790_s2] sm:$0xff] }
  0x2b   : > { %v701_v54 = vld [vmem:[%s2791_s3 + $0x18] sm:$0xff]  ;;  %vm1011_vm13 = vcmask 523264   ;;  %vm1014_vm14 = vcmask 785408  }
  0x2c   : > { %625 = vmatpush.bf16.msra.mxu0 %v1831_v35  ;;  %v491_v52 = vadd.f32 %v2219_v24, %v490_v45  ;;  %vm660_vm7 = vcmp.lt.s32.totalorder %v2494_v38, 112  ;;  %vm673_vm8 = vcmp.lt.s32.totalorder %v2494_v38, 16 }
  0x2d   : > { %639 = vmatpush.bf16.msra.mxu1 %v1835_v37 }
  0x2e   : > { %v2483_v63 = vsel %vm492_vm0, %v2219_v24, %v491_v52  ;;  %v2216_v24 = vld [vmem:[%s457_s23] ss:$0 sm:$0xff]  ;;  %v699_v52 = vld [vmem:[%s2791_s3 + $0x8] sm:$0xff] }
  0x2f   : > { %485 = vadd.xlane.f32.xlu0 %v482_v10 }
  0x30   : > { %626 = vmatpush.bf16.msra.mxu0 %v1823_v42 }
  0x31   : > { %640 = vmatpush.bf16.msra.mxu1 %v1827_v44  ;;  %v689_v44 = vld [vmem:[%s2790_s2 + $0x18] sm:$0xff] }
  0x34   : > { %627 = vmatpush.bf16.msra.mxu0 %v1815_v49 }
  0x35   : > { %641 = vmatpush.bf16.msra.mxu1 %v1819_v51 }
  0x38   : > { %628 = vmatpush.bf16.msra.mxu0 %v1807_v56 }
  0x39   : > { %642 = vmatpush.bf16.msra.mxu1 %v1811_v60  ;;  %v688_v60 = vld [vmem:[%s2790_s2 + $0x10] sm:$0xff] }
  0x3c   : > { %629 = vmatpush.bf16.msra.mxu0 %v1799_v0 }
  0x3d   : > { %643 = vmatpush.bf16.msra.mxu1 %v1803_v1 }
  0x9a   : > { %v484_v2 = vpop.xlane.xlu0 %483 }
  0x9b   : > { %v494_v3 = vmul.f32 %v2483_v63, %v484_v2 }
  0x9d   : > { %v496_v4 = vadd.f32 1e-06, %v494_v3  ;;  %v678_v3 = vld [vmem:[%s2789_s1] sm:$0xff] }
  0x9f   : > { %2220 = vrsqrt.f32 %v496_v4  ;;  %vm504_vm2 = vweird.f32 %v496_v4 }
  0xa2   : > { %v486_v6 = vpop.xlane.xlu0 %485 }
  0xa3   : > { %v495_v7 = vmul.f32 %v2483_v63, %v486_v6  ;;  %v700_v6 = vld [vmem:[%s2791_s3 + $0x10] sm:$0xff] }
  0xa5   : > { %v2221_v8 = vpop.eup %2220  ;;  %v497_v10 = vadd.f32 1e-06, %v495_v7 }
  0xa6   : > { %v499_v11 = vmul.f32 %v2221_v8, %v496_v4  ;;  %vm505_vm1 = vweird.f32 %v2221_v8  ;;  %v680_v4 = vld [vmem:[%s2789_s1 + $0x10] sm:$0xff] }
  0xa7   : > { %2222 = vrsqrt.f32 %v497_v10  ;;  %vm506_vm3 = vmor %vm504_vm2, %vm505_vm1  ;;  %vm514_vm5 = vweird.f32 %v497_v10 }
  0xa8   : > { %v500_v12 = vmul.f32 %v2221_v8, %v499_v11 }
  0xaa   : > { %v501_v13 = vmul.f32 0.5, %v500_v12 }
  0xac   : > { %v502_v14 = vsub.f32 1.5, %v501_v13 }
  0xad   : > { %v2223_v15 = vpop.eup %2222 }
  0xae   : > { %v509_v16 = vmul.f32 %v2223_v15, %v497_v10  ;;  %v503_v17 = vmul.f32 %v2221_v8, %v502_v14  ;;  %vm515_vm4 = vweird.f32 %v2223_v15 }
  0xaf   : > { %vm516_vm6 = vmor %vm514_vm5, %vm515_vm4 }
  0xb0   : > { %v510_v18 = vmul.f32 %v2223_v15, %v509_v16  ;;  %v507_v21 = vsel %vm506_vm3, %v2221_v8, %v503_v17  ;;  %v698_v17 = vld [vmem:[%s2791_s3] sm:$0xff] }
  0xb1   : > { %v518_v23 = vmul.f32 %v507_v21, %v2443_v5 }
  0xb2   : > { %v511_v19 = vmul.f32 0.5, %v510_v18 }
  0xb3   : > { %v523_v27 = vmul.f32 %v2216_v24, %v518_v23 }
  0xb4   : > { %v512_v20 = vsub.f32 1.5, %v511_v19 }
  0xb6   : > { %v513_v22 = vmul.f32 %v2223_v15, %v512_v20 }
  0xb8   : > { %v517_v25 = vsel %vm516_vm6, %v2223_v15, %v513_v22 }
  0xb9   : > { %v519_v26 = vmul.f32 %v517_v25, %v2447_v9 }
  0xbb   : > { %v524_v28 = vmul.f32 %v2216_v24, %v519_v26  ;;  %v2555_v26 = vshrl.u32 %v658_v36, 7 }
  0xbd   : > { %v525_v29 = vpack.c.bf16 %v524_v28, %v523_v27  ;;  %vm713_vm10 = vcmp.le.s32.totalorder %v2494_v38, %v2555_v26 }
  0xbf   : > { %630 = vmatmul.bf16.vlgmr.msra.gmra.mxu0 %v525_v29  ;;  %644 = vmatmul.bf16.vlgmr.msra.gmra.mxu1 %v525_v29 }
 0x13c   : > { %v631_v30 = vpop.f32.mrf.mxu0  ;;  %v645_v31 = vpop.f32.mrf.mxu1 }
 0x13d   : > { %654 = vrot.lane.b32.xlu2 %v645_v31, %s2323_s24  ;;  %665 = vrot.lane.b32.xlu0 %v631_v30, %s2324_s28  ;;  %v683_v49 = vmul.f32 %v679_v43, %v645_v31  ;;  %v682_v13 = vmul.f32 %v678_v3, %v631_v30 }
 0x13e   : > { %650 = vrot.lane.b32.xlu1 %v631_v30, %s2323_s24 }
 0x144   : > { %v633_v32 = vpop.f32.mrf.mxu0  ;;  %v647_v33 = vpop.f32.mrf.mxu1 }
 0x145   : > { %656 = vrot.lane.b32.xlu2 %v647_v33, %s2323_s24  ;;  %v685_v55 = vmul.f32 %v681_v48, %v647_v33  ;;  %v684_v14 = vmul.f32 %v680_v4, %v633_v32 }
 0x146   : > { %652 = vrot.lane.b32.xlu1 %v633_v32, %s2323_s24  ;;  %s2327_s24 = smov 64  }
 0x14d   : > { %669 = vrot.lane.b32.xlu2 %v645_v31, %s2324_s28  ;;  %v2564_v31 = vadd.s32 8, %v2555_v26 }
 0x14e   : > { %667 = vrot.lane.b32.xlu1 %v633_v32, %s2324_s28 }
 0x14f   : > { %vm714_vm12 = vcmp.le.s32.totalorder %v2494_v38, %v2564_v31 }
 0x156   : > { %671 = vrot.lane.b32.xlu1 %v647_v33, %s2324_s28 }
 0x197   : > { %v655_v35 = vpop.permute.xlu2 %654 }
 0x19f   : > { %v657_v39 = vpop.permute.xlu2 %656 }
 0x1a7   : > { %v670_v50 = vpop.permute.xlu2 %669 }
 0x1af   : > { %v666_v46 = vpop.permute.xlu0 %665 }
 0x1b0   : > { %v651_v34 = vpop.permute.xlu1 %650  ;;  %v674_v53 = vsel %vm673_vm8, %v666_v46, %v670_v50  ;;  %v676_v18 = vsel %vm673_vm8, %v670_v50, %v666_v46 }
 0x1b1   : > { %v663_v42 = vsel %vm660_vm7, %v655_v35, %v651_v34  ;;  %v661_v59 = vsel %vm660_vm7, %v651_v34, %v655_v35  ;;  %v703_v0 = vmul.f32 %v699_v52, %v674_v53  ;;  %v702_v22 = vmul.f32 %v698_v17, %v676_v18 }
 0x1b2   : > { %v691_v47 = vmul.f32 %v687_v41, %v663_v42  ;;  %v690_v8 = vmul.f32 %v686_v58, %v661_v59 }
 0x1b4   : > { %v695_v56 = vadd.f32 %v691_v47, %v683_v49  ;;  %v694_v19 = vadd.f32 %v690_v8, %v682_v13 }
 0x1b6   : > { %v707_v10 = vadd.f32 %v703_v0, %v695_v56  ;;  %v706_v24 = vadd.f32 %v702_v22, %v694_v19 }
 0x1b8   : > { %v653_v37 = vpop.permute.xlu1 %652 }
 0x1b9   : > { %v664_v45 = vsel %vm660_vm7, %v657_v39, %v653_v37  ;;  %v662_v61 = vsel %vm660_vm7, %v653_v37, %v657_v39 }
 0x1ba   : > { %v693_v51 = vmul.f32 %v689_v44, %v664_v45  ;;  %v692_v11 = vmul.f32 %v688_v60, %v662_v61 }
 0x1bc   : > { %v697_v1 = vadd.f32 %v693_v51, %v685_v55  ;;  %v696_v20 = vadd.f32 %v692_v11, %v684_v14 }
 0x1c0   : > { %v668_v40 = vpop.permute.xlu1 %667 }
 0x1c8   : > { %v672_v57 = vpop.permute.xlu1 %671 }
 0x1c9   : > { %v675_v62 = vsel %vm673_vm8, %v668_v40, %v672_v57  ;;  %v677_v7 = vsel %vm673_vm8, %v672_v57, %v668_v40 }
 0x1ca   : > { %v705_v2 = vmul.f32 %v701_v54, %v675_v62  ;;  %v704_v15 = vmul.f32 %v700_v6, %v677_v7 }
 0x1cc   : > { %v709_v12 = vadd.f32 %v705_v2, %v697_v1  ;;  %v708_v23 = vadd.f32 %v704_v15, %v696_v20 }
 0x1ce   : > { %v2545_v16 = vpack.c.bf16 %v709_v12, %v707_v10  ;;  %v715_v25 = vpack.c.bf16 %v708_v23, %v706_v24 }
 0x1d0   : > { %v722_v21 = vsel %vm717_vm9, %v2545_v16, 0 }
 0x1d1   : > { %731 = vmatpush.bf16.xpose.msra.mxu2 %v722_v21 }
 0x1d8   : > { %1860 = vmatmul.msk.bf16.vlgmr.msra.gmra.mxu2 %vm717_vm9, %v715_v25 }
 0x25b   : > { %v733_v27 = vpop.f32.mrf.mxu2 }
 0x25c   : > { %v738_v28 = vmul.f32 0.17677669, %v733_v27 }
 0x25e   : > { %v740_v29 = vsel %vm713_vm10, %v738_v28, -1e+30 }
 0x25f   : > { %v743_v30 = vsel %vm742_vm11, %v740_v29, -inf }
 0x260   : > { %744 = vmax.xlane.f32.xlu2 %v743_v30 }
 0x263   : > { %v735_v32 = vpop.f32.mrf.mxu2 }
 0x264   : > { %v739_v33 = vmul.f32 0.17677669, %v735_v32 }
 0x266   : > { %v741_v34 = vsel %vm714_vm12, %v739_v33, -1e+30 }
 0x267   : > { %v746_v35 = vsel %vm742_vm11, %v741_v34, -inf }
 0x268   : > { %747 = vmax.xlane.f32.xlu1 %v746_v35 }
 0x281   : > { %788 = vrot.lane.b32.xlu1 %v715_v25, %s2325_s4 }
 0x2d3   : > { %v745_v36 = vpop.xlane.xlu2 %744 }
 0x2d4   : > { %v749_v37 = vsub.f32 %v740_v29, %v745_v36 }
 0x2d6   : > { %v751_v39 = vmul.f32 1.442695, %v749_v37 }
 0x2d8   : > { %2224 = vpow2.f32 %v751_v39 }
 0x2db   : > { %v748_v40 = vpop.xlane.xlu1 %747 }
 0x2dc   : > { %v750_v41 = vsub.f32 %v741_v34, %v748_v40 }
 0x2de   : > { %v2225_v42 = vpop.eup %2224  ;;  %v753_v43 = vmul.f32 1.442695, %v750_v41 }
 0x2df   : > { %v755_v44 = vsel %vm742_vm11, %v2225_v42, 0.0 }
 0x2e0   : > { %2226 = vpow2.f32 %v753_v43  ;;  %756 = vadd.xlane.f32.xlu0 %v755_v44 }
 0x2e6   : > { %v2227_v45 = vpop.eup %2226 }
 0x2e7   : > { %v758_v46 = vsel %vm742_vm11, %v2227_v45, 0.0 }
 0x2e8   : > { %759 = vadd.xlane.f32.xlu2 %v758_v46 }
 0x2f3   : > { %v789_v58 = vpop.permute.xlu1 %788 }
 0x2f4   : > { %853 = vrot.lane.b32.xlu0 %v2545_v16, %s2325_s4 }
 0x2fc   : > { %922 = vrot.lane.b32.xlu0 %v715_v25, %s2326_s17 }
 0x300   : > { %767 = vrot.lane.b32.xlu2 %v2545_v16, %s2327_s24 }
 0x308   : > { %851 = vrot.lane.b32.xlu2 %v715_v25, %s2327_s24 }
 0x353   : > { %v757_v47 = vpop.xlane.xlu0 %756 }
 0x354   : > { %2228 = vrcp.f32 %v757_v47 }
 0x35a   : > { %v2229_v49 = vpop.eup %2228 }
 0x35b   : > { %v760_v48 = vpop.xlane.xlu2 %759  ;;  %v763_v52 = vmul.f32 %v2229_v49, %v2225_v42 }
 0x35c   : > { %2230 = vrcp.f32 %v760_v48 }
 0x362   : > { %v2231_v50 = vpop.eup %2230 }
 0x363   : > { %v768_v51 = vpop.permute.xlu2 %767  ;;  %v764_v53 = vmul.f32 %v2231_v50, %v2227_v45 }
 0x364   : > { %780 = vmatpush.bf16.msra.mxu3 %v768_v51  ;;  %844 = vmatpush.bf16.msrb.mxu2 %v768_v51 }
 0x365   : > { %v765_v54 = vpack.c.bf16 %v764_v53, %v763_v52 }
 0x366   : > { %v854_v55 = vpop.permute.xlu0 %853 }
 0x367   : > { %v859_v56 = vsel %vm717_vm9, %v854_v55, 0  ;;  %1861 = vmatmul.msk.bf16.vlgmr.msra.gmra.mxu3 %vm742_vm11, %v765_v54 }
 0x368   : > { %800 = vmatpush.bf16.xpose.msrb.mxu3 %v722_v21  ;;  %934 = vmatpush.bf16.xpose.msrb.mxu1 %v859_v56 }
 0x36b   : > { %v852_v59 = vpop.permute.xlu2 %851 }
 0x36e   : > { %v923_v57 = vpop.permute.xlu0 %922 }
 0x36f   : > { %1866 = vmatmul.msk.bf16.vlgmr.msrb.gmra.mxu1 %vm717_vm9, %v923_v57 }
 0x370   : > { %868 = vmatpush.bf16.xpose.msra.mxu3 %v859_v56 }
 0x377   : > { %1862 = vmatmul.msk.bf16.vlgmr.msrb.gmra.mxu3 %vm717_vm9, %v789_v58 }
 0x387   : > { %1864 = vmatmul.msk.bf16.vlgmr.msra.gmra.mxu3 %vm717_vm9, %v852_v59 }
 0x3ea   : > { %v2586_v60 = vpop.f32.mrf.mxu3 }
 0x3ec   : > { %v936_v3 = vpop.f32.mrf.mxu1 }
 0x3ed   : > { %v941_v10 = vmul.f32 0.17677669, %v936_v3 }
 0x3ef   : > { %v943_v13 = vsel %vm713_vm10, %v941_v10, -1e+30 }
 0x3f0   : > { %v945_v18 = vsel %vm742_vm11, %v943_v13, -inf }
 0x3f2   : > { %v2588_v61 = vpop.f32.mrf.mxu3 }
 0x3f4   : > { %v938_v14 = vpop.f32.mrf.mxu1 }
 0x3f5   : > { %v942_v19 = vmul.f32 0.17677669, %v938_v14 }
 0x3f7   : > { %v944_v22 = vsel %vm714_vm12, %v942_v19, -1e+30 }
 0x3f8   : > { %v948_v24 = vsel %vm742_vm11, %v944_v22, -inf }
 0x3fa   : > { %v802_v62 = vpop.f32.mrf.mxu3 }
 0x3fb   : > { %v807_v0 = vmul.f32 0.17677669, %v802_v62 }
 0x3fd   : > { %v809_v1 = vsel %vm713_vm10, %v807_v0, -1e+30 }
 0x3fe   : > { %v811_v2 = vsel %vm742_vm11, %v809_v1, -inf }
 0x3ff   : > { %812 = vmax.xlane.f32.xlu1 %v811_v2 }
 0x402   : > { %v804_v4 = vpop.f32.mrf.mxu3 }
 0x403   : > { %v808_v6 = vmul.f32 0.17677669, %v804_v4 }
 0x405   : > { %v810_v7 = vsel %vm714_vm12, %v808_v6, -1e+30 }
 0x406   : > { %v814_v8 = vsel %vm742_vm11, %v810_v7, -inf }
 0x407   : > { %815 = vmax.xlane.f32.xlu2 %v814_v8 }
 0x40a   : > { %v870_v11 = vpop.f32.mrf.mxu3 }
 0x40b   : > { %v875_v12 = vmul.f32 0.17677669, %v870_v11 }
 0x40d   : > { %v877_v15 = vsel %vm713_vm10, %v875_v12, -1e+30 }
 0x40e   : > { %v879_v17 = vsel %vm742_vm11, %v877_v15, -inf }
 0x40f   : > { %880 = vmax.xlane.f32.xlu0 %v879_v17  ;;  %946 = vmax.xlane.f32.xlu2 %v945_v18 }
 0x412   : > { %v872_v20 = vpop.f32.mrf.mxu3 }
 0x413   : > { %v876_v21 = vmul.f32 0.17677669, %v872_v20 }
 0x415   : > { %v878_v23 = vsel %vm714_vm12, %v876_v21, -1e+30 }
 0x416   : > { %v882_v25 = vsel %vm742_vm11, %v878_v23, -inf }
 0x417   : > { %949 = vmax.xlane.f32.xlu0 %v948_v24  ;;  %883 = vmax.xlane.f32.xlu1 %v882_v25 }
 0x472   : > { %v813_v26 = vpop.xlane.xlu1 %812 }
 0x473   : > { %v817_v27 = vsub.f32 %v809_v1, %v813_v26 }
 0x475   : > { %v819_v28 = vmul.f32 1.442695, %v817_v27 }
 0x477   : > { %2232 = vpow2.f32 %v819_v28  ;;  %v2128_v28 = vld [vmem:[%s2415_s27 + $0x38] sm:$0xff] }
 0x478   : > { %1084 = vmatpush.bf16.msrb.mxu3 %v2128_v28  ;;  %v2150_v28 = vld [vmem:[%s2426_s15 + $0xac] sm:$0xf] }
 0x47a   : > { %v816_v29 = vpop.xlane.xlu2 %815 }
 0x47b   : > { %v818_v30 = vsub.f32 %v810_v7, %v816_v29  ;;  %v2127_v29 = vld [vmem:[%s2415_s27 + $0x30] sm:$0xff] }
 0x47c   : > { %1085 = vmatpush.bf16.msrb.mxu3 %v2127_v29  ;;  %v1992_v29 = vld [vmem:[%s2426_s15 + $0xb8] sm:$0xf0] }
 0x47d   : > { %v2233_v32 = vpop.eup %2232  ;;  %v821_v33 = vmul.f32 1.442695, %v818_v30  ;;  %v2126_v30 = vld [vmem:[%s2415_s27 + $0x28] sm:$0xff] }
 0x47e   : > { %v823_v34 = vsel %vm742_vm11, %v2233_v32, 0.0 }
 0x47f   : > { %2234 = vpow2.f32 %v821_v33  ;;  %824 = vadd.xlane.f32.xlu1 %v823_v34  ;;  %v2124_v33 = vld [vmem:[%s2415_s27 + $0x18] sm:$0xff]  ;;  %v2123_v34 = vld [vmem:[%s2415_s27 + $0x10] sm:$0xff] }
 0x480   : > { %1086 = vmatpush.bf16.msrb.mxu3 %v2126_v30  ;;  %v1995_v30 = vor.u32 %v2150_v28, %v1992_v29  ;;  %v2130_v29 = vld [vmem:[%s2426_s15 + $0xc] sm:$0xf] }
 0x482   : > { %v881_v38 = vpop.xlane.xlu0 %880  ;;  %v947_v31 = vpop.xlane.xlu2 %946 }
 0x483   : > { %v885_v35 = vsub.f32 %v877_v15, %v881_v38  ;;  %v951_v36 = vsub.f32 %v943_v13, %v947_v31  ;;  %v2122_v38 = vld [vmem:[%s2415_s27 + $0x8] sm:$0xff]  ;;  %v2121_v31 = vld [vmem:[%s2415_s27] sm:$0xff] }
 0x485   : > { %v2235_v37 = vpop.eup %2234  ;;  %v887_v39 = vmul.f32 1.442695, %v885_v35  ;;  %v953_v40 = vmul.f32 1.442695, %v951_v36 }
 0x486   : > { %v826_v41 = vsel %vm742_vm11, %v2235_v37, 0.0 }
 0x487   : > { %2236 = vpow2.f32 %v887_v39  ;;  %827 = vadd.xlane.f32.xlu2 %v826_v41 }
 0x488   : > { %2238 = vpow2.f32 %v953_v40 }
 0x48a   : > { %v950_v42 = vpop.xlane.xlu0 %949  ;;  %v884_v43 = vpop.xlane.xlu1 %883 }
 0x48b   : > { %v952_v44 = vsub.f32 %v944_v22, %v950_v42  ;;  %v886_v45 = vsub.f32 %v878_v23, %v884_v43 }
 0x48d   : > { %v2237_v46 = vpop.eup %2236  ;;  %v955_v47 = vmul.f32 1.442695, %v952_v44  ;;  %v889_v48 = vmul.f32 1.442695, %v886_v45 }
 0x48e   : > { %v2239_v49 = vpop.eup %2238  ;;  %v891_v50 = vsel %vm742_vm11, %v2237_v46, 0.0 }
 0x48f   : > { %2240 = vpow2.f32 %v955_v47  ;;  %892 = vadd.xlane.f32.xlu0 %v891_v50  ;;  %v957_v51 = vsel %vm742_vm11, %v2239_v49, 0.0 }
 0x490   : > { %2242 = vpow2.f32 %v889_v48  ;;  %958 = vadd.xlane.f32.xlu2 %v957_v51 }
 0x495   : > { %v2241_v52 = vpop.eup %2240 }
 0x496   : > { %v2243_v53 = vpop.eup %2242  ;;  %v960_v54 = vsel %vm742_vm11, %v2241_v52, 0.0 }
 0x497   : > { %961 = vadd.xlane.f32.xlu0 %v960_v54  ;;  %v894_v55 = vsel %vm742_vm11, %v2243_v53, 0.0 }
 0x498   : > { %895 = vadd.xlane.f32.xlu1 %v894_v55 }
 0x4b1   : > { %902 = vrot.lane.b32.xlu1 %v2545_v16, %s2326_s17 }
 0x4f2   : > { %v825_v56 = vpop.xlane.xlu1 %824 }
 0x4f3   : > { %2244 = vrcp.f32 %v825_v56  ;;  %v2159_v56 = vld [vmem:[%s2426_s15 + $0xec] sm:$0xf0] }
 0x4f9   : > { %v2245_v58 = vpop.eup %2244 }
 0x4fa   : > { %v828_v57 = vpop.xlane.xlu2 %827  ;;  %v831_v62 = vmul.f32 %v2245_v58, %v2233_v32  ;;  %v2125_v32 = vld [vmem:[%s2415_s27 + $0x20] sm:$0xff] }
 0x4fb   : > { %2246 = vrcp.f32 %v828_v57  ;;  %1087 = vmatpush.bf16.msrb.mxu3 %v2125_v32  ;;  %v2157_v57 = vld [vmem:[%s2426_s15 + $0xe4] sm:$0xf]  ;;  %v1966_v32 = vld [vmem:[%s2426_s15 + $0x80] sm:$0xf] }
 0x4ff   : > { %1088 = vmatpush.bf16.msrb.mxu3 %v2124_v33  ;;  %v2147_v33 = vld [vmem:[%s2426_s15 + $0x8c] sm:$0xf0] }
 0x501   : > { %v2247_v59 = vpop.eup %2246 }
 0x502   : > { %v832_v0 = vmul.f32 %v2247_v59, %v2235_v37  ;;  %v893_v2 = vpop.xlane.xlu0 %892  ;;  %v2016_v59 = vld [vmem:[%s2426_s15 + $0xf0] sm:$0xf0] }
 0x503   : > { %v959_v6 = vpop.xlane.xlu2 %958  ;;  %1089 = vmatpush.bf16.msrb.mxu3 %v2123_v34  ;;  %v2145_v34 = vld [vmem:[%s2426_s15 + $0x84] sm:$0xf] }
 0x504   : > { %v833_v1 = vpack.c.bf16 %v832_v0, %v831_v62  ;;  %v2022_v62 = vld [vmem:[%s2426_s15 + $0xe8] sm:$0xf]  ;;  %v2160_v0 = vld [vmem:[%s2426_s15 + $0xf4] sm:$0xf0] }
 0x506   : > { %1863 = vmatmul.msk.bf16.vlgmr.msrb.gmra.mxu2 %vm742_vm11, %v833_v1  ;;  %v2023_v1 = vor.u32 %v2160_v0, %v2022_v62  ;;  %v2140_v62 = vld [vmem:[%s2426_s15 + $0x54] sm:$0xf0] }
 0x507   : > { %1090 = vmatpush.bf16.msrb.mxu3 %v2122_v38  ;;  %v1967_v38 = vor.u32 %v2147_v33, %v1966_v32 }
 0x50a   : > { %v962_v3 = vpop.xlane.xlu0 %961 }
 0x50b   : > { %v896_v4 = vpop.xlane.xlu1 %895  ;;  %2248 = vrcp.f32 %v962_v3  ;;  %1091 = vmatpush.bf16.msrb.mxu3 %v2121_v31  ;;  %v2024_v3 = vld [vmem:[%s2426_s15 + $0xf8] sm:$0xf0]  ;;  %v1968_v31 = vld [vmem:[%s2426_s15 + $0x90] sm:$0xf0] }
 0x50c   : > { %2250 = vrcp.f32 %v896_v4 }
 0x50d   : > { %2252 = vrcp.f32 %v893_v2  ;;  %v2158_v2 = vld [vmem:[%s2426_s15 + $0xec] sm:$0xf] }
 0x50e   : > { %2254 = vrcp.f32 %v959_v6  ;;  %v2027_v4 = vor.u32 %v2158_v2, %v2024_v3  ;;  %v1998_v6 = vld [vmem:[%s2426_s15 + $0xc0] sm:$0xf]  ;;  %v1944_v2 = vld [vmem:[%s2426_s15 + $0x58] sm:$0xf0] }
 0x510   : > { %1373 = vmatpush.bf16.msra.mxu3 %v2027_v4  ;;  %v1918_v4 = vld [vmem:[%s2426_s15 + $0x20] sm:$0xf] }
 0x511   : > { %v2249_v16 = vpop.eup %2248 }
 0x512   : > { %v2251_v7 = vpop.eup %2250  ;;  %v966_v11 = vmul.f32 %v2249_v16, %v2241_v52  ;;  %v2155_v16 = vld [vmem:[%s2426_s15 + $0xcc] sm:$0xf0] }
 0x513   : > { %v2253_v8 = vpop.eup %2252  ;;  %v900_v12 = vmul.f32 %v2251_v7, %v2243_v53  ;;  %v2153_v7 = vld [vmem:[%s2426_s15 + $0xc4] sm:$0xf] }
 0x514   : > { %v2255_v10 = vpop.eup %2254  ;;  %v899_v13 = vmul.f32 %v2253_v8, %v2237_v46  ;;  %v1999_v8 = vor.u32 %v2155_v16, %v1998_v6  ;;  %v2135_v6 = vld [vmem:[%s2426_s15 + $0x2c] sm:$0xf0]  ;;  %v2133_v16 = vld [vmem:[%s2426_s15 + $0x24] sm:$0xf] }
 0x515   : > { %v965_v14 = vmul.f32 %v2255_v10, %v2239_v49  ;;  %v2000_v10 = vld [vmem:[%s2426_s15 + $0xd0] sm:$0xf0] }
 0x516   : > { %v901_v18 = vpack.c.bf16 %v900_v12, %v899_v13  ;;  %v2156_v12 = vld [vmem:[%s2426_s15 + $0xd4] sm:$0xf0]  ;;  %v2003_v13 = vor.u32 %v2153_v7, %v2000_v10  ;;  %v1919_v7 = vor.u32 %v2135_v6, %v1918_v4  ;;  %v1926_v10 = vld [vmem:[%s2426_s15 + $0x28] sm:$0xf] }
 0x517   : > { %v967_v17 = vpack.c.bf16 %v966_v11, %v965_v14  ;;  %v2006_v11 = vld [vmem:[%s2426_s15 + $0xc8] sm:$0xf] }
 0x518   : > { %v2007_v14 = vor.u32 %v2156_v12, %v2006_v11  ;;  %v2136_v11 = vld [vmem:[%s2426_s15 + $0x34] sm:$0xf0]  ;;  %v2170_v4 = vld [vmem:[%s2421_s12 + $0x48] sm:$0xff] }
 0x523   : > { %v903_v15 = vpop.permute.xlu1 %902 }
 0x524   : > { %915 = vmatpush.bf16.msra.mxu2 %v903_v15  ;;  %978 = vmatpush.bf16.msra.mxu1 %v903_v15  ;;  %v2154_v15 = vld [vmem:[%s2426_s15 + $0xcc] sm:$0xf] }
 0x527   : > { %1865 = vmatmul.msk.bf16.vlgmr.msra.gmra.mxu2 %vm742_vm11, %v901_v18  ;;  %1867 = vmatmul.msk.bf16.vlgmr.msra.gmra.mxu1 %vm742_vm11, %v967_v17  ;;  %v2008_v17 = vld [vmem:[%s2426_s15 + $0xd8] sm:$0xf0] }
 0x528   : > { %1359 = vmatpush.bf16.msrb.mxu1 %v2023_v1  ;;  %v2011_v18 = vor.u32 %v2154_v15, %v2008_v17  ;;  %v2138_v1 = vld [vmem:[%s2426_s15 + $0x4c] sm:$0xf]  ;;  %v1928_v15 = vld [vmem:[%s2426_s15 + $0x38] sm:$0xf0] }
 0x529   : > { %v1947_v3 = vor.u32 %v2138_v1, %v1944_v2  ;;  %v2171_v1 = vld [vmem:[%s2421_s12 + $0x50] sm:$0xff] }
 0x52a   : > { %1374 = vmatpush.bf16.msra.mxu3 %v2011_v18  ;;  %v1902_v18 = vld [vmem:[%s2426_s15] sm:$0xf] }
 0x52c   : > { %1360 = vmatpush.bf16.msrb.mxu1 %v2007_v14  ;;  %v2134_v14 = vld [vmem:[%s2426_s15 + $0x2c] sm:$0xf] }
 0x52d   : > { %v1931_v17 = vor.u32 %v2134_v14, %v1928_v15  ;;  %v2162_v14 = vld [vmem:[%s2421_s12 + $0x8] sm:$0xff] }
 0x52e   : > { %1375 = vmatpush.bf16.msra.mxu3 %v1995_v30  ;;  %v1912_v30 = vld [vmem:[%s2426_s15 + $0x18] sm:$0xf0] }
 0x52f   : > { %v1915_v32 = vor.u32 %v2130_v29, %v1912_v30 }
 0x589   : > { %v846_v19 = vpop.f32.mrf.mxu2 }
 0x591   : > { %v848_v20 = vpop.f32.mrf.mxu2 }
 0x592   : > { %v2201_v21 = vpack.i.bf16 %v848_v20, %v846_v19  ;;  %v1982_v19 = vld [vmem:[%s2426_s15 + $0xa0] sm:$0xf]  ;;  %v2151_v20 = vld [vmem:[%s2426_s15 + $0xac] sm:$0xf0] }
 0x594   : > { %2202 = vrot.lane.b32.xlu2 %v2201_v21, %s2326_s17  ;;  %v2149_v21 = vld [vmem:[%s2426_s15 + $0xa4] sm:$0xf] }
 0x5a4   : > { %v980_v22 = vpop.f32.mrf.mxu1 }
 0x5aa   : > { %v917_v23 = vpop.f32.mrf.mxu2 }
 0x5ac   : > { %v982_v24 = vpop.f32.mrf.mxu1 }
 0x5ad   : > { %v2211_v25 = vpack.i.bf16 %v982_v24, %v980_v22  ;;  %v1983_v22 = vor.u32 %v2151_v20, %v1982_v19  ;;  %v1990_v24 = vld [vmem:[%s2426_s15 + $0xa8] sm:$0xf]  ;;  %v2131_v19 = vld [vmem:[%s2426_s15 + $0xc] sm:$0xf0]  ;;  %v2129_v20 = vld [vmem:[%s2426_s15 + $0x4] sm:$0xf] }
 0x5af   : > { %2212 = vrot.lane.b32.xlu1 %v2211_v25, %s2325_s4  ;;  %v2152_v25 = vld [vmem:[%s2426_s15 + $0xb4] sm:$0xf0] }
 0x5b2   : > { %v919_v26 = vpop.f32.mrf.mxu2 }
 0x5b3   : > { %v2206_v27 = vpack.i.bf16 %v919_v26, %v917_v23  ;;  %v1984_v23 = vld [vmem:[%s2426_s15 + $0xb0] sm:$0xf0] }
 0x5b4   : > { %v1987_v26 = vor.u32 %v2149_v21, %v1984_v23  ;;  %v1904_v23 = vld [vmem:[%s2426_s15 + $0x10] sm:$0xf0] }
 0x5b5   : > { %2207 = vrot.lane.b32.xlu0 %v2206_v27, %s2327_s24  ;;  %v1991_v27 = vor.u32 %v2152_v25, %v1990_v24  ;;  %v1910_v24 = vld [vmem:[%s2426_s15 + $0x8] sm:$0xf]  ;;  %v2132_v25 = vld [vmem:[%s2426_s15 + $0x14] sm:$0xf0] }
 0x5b6   : > { %v1911_v28 = vor.u32 %v2132_v25, %v1910_v24 }
 0x5b7   : > { %1361 = vmatpush.bf16.msrb.mxu1 %v1991_v27  ;;  %v1907_v27 = vor.u32 %v2129_v20, %v1904_v23 }
 0x5ee   : > { %v2203_v35 = vpop.permute.xlu2 %2202 }
 0x5ef   : > { %v2205_v36 = vunpack.i.h.bf16 %v2203_v35  ;;  %v2204_v37 = vunpack.i.l.bf16 %v2203_v35  ;;  %v1974_v35 = vld [vmem:[%s2426_s15 + $0x88] sm:$0xf] }
 0x5f1   : > { %v1010_v43 = vsel %vm717_vm9, %v2588_v61, %v2205_v36  ;;  %v1009_v44 = vsel %vm717_vm9, %v2586_v60, %v2204_v37  ;;  %v2148_v36 = vld [vmem:[%s2426_s15 + $0x94] sm:$0xf0]  ;;  %v1971_v37 = vor.u32 %v2145_v34, %v1968_v31 }
 0x621   : > { %v2213_v39 = vpop.permute.xlu1 %2212 }
 0x622   : > { %v2215_v45 = vunpack.i.h.bf16 %v2213_v39  ;;  %v2214_v46 = vunpack.i.l.bf16 %v2213_v39  ;;  %v1975_v39 = vor.u32 %v2148_v36, %v1974_v35 }
 0x624   : > { %1362 = vmatpush.bf16.msrb.mxu1 %v1975_v39 }
 0x627   : > { %v2208_v40 = vpop.permute.xlu0 %2207 }
 0x628   : > { %v2210_v41 = vunpack.i.h.bf16 %v2208_v40  ;;  %v2209_v42 = vunpack.i.l.bf16 %v2208_v40  ;;  %v2146_v40 = vld [vmem:[%s2426_s15 + $0x8c] sm:$0xf] }
 0x62a   : > { %v1012_v47 = vsel %vm1011_vm13, %v1009_v44, %v2209_v42  ;;  %v1013_v48 = vsel %vm1011_vm13, %v1010_v43, %v2210_v41  ;;  %v1976_v41 = vld [vmem:[%s2426_s15 + $0x98] sm:$0xf0]  ;;  %v1950_v43 = vld [vmem:[%s2426_s15 + $0x60] sm:$0xf]  ;;  %v2143_v44 = vld [vmem:[%s2426_s15 + $0x6c] sm:$0xf0] }
 0x62b   : > { %v1015_v49 = vsel %vm1014_vm14, %v1012_v47, %v2214_v46  ;;  %v1016_v50 = vsel %vm1014_vm14, %v1013_v48, %v2215_v45  ;;  %v1979_v42 = vor.u32 %v2146_v40, %v1976_v41  ;;  %v2141_v45 = vld [vmem:[%s2426_s15 + $0x64] sm:$0xf]  ;;  %v1951_v46 = vor.u32 %v2143_v44, %v1950_v43  ;;  %v1952_v47 = vld [vmem:[%s2426_s15 + $0x70] sm:$0xf0]  ;;  %v1958_v48 = vld [vmem:[%s2426_s15 + $0x68] sm:$0xf] }
 0x62c   : > { %v1017_v51 = vpack.c.bf16 %v1016_v50, %v1015_v49  ;;  %v2144_v49 = vld [vmem:[%s2426_s15 + $0x74] sm:$0xf0]  ;;  %v1955_v50 = vor.u32 %v2141_v45, %v1952_v47 }
 0x62d   : > { %1376 = vmatpush.bf16.msra.mxu3 %v1979_v42 }
 0x62e   : > { %1092 = vmatmul.bf16.vlgmr.msrb.gmra.mxu3 %v1017_v51  ;;  %v1959_v51 = vor.u32 %v2144_v49, %v1958_v48 }
 0x630   : > { %1363 = vmatpush.bf16.msrb.mxu1 %v1959_v51 }
 0x6b1   : > { %v1093_v52 = vpop.f32.mrf.mxu3 }
 0x6b2   : > { %v2641_v61 = vadd.f32 %v1093_v52, %v2443_v5  ;;  %v2014_v5 = vld [vmem:[%s2426_s15 + $0xe0] sm:$0xf]  ;;  %v2142_v52 = vld [vmem:[%s2426_s15 + $0x6c] sm:$0xf] }
 0x6b3   : > { %v2015_v58 = vor.u32 %v2159_v56, %v2014_v5  ;;  %v2139_v5 = vld [vmem:[%s2426_s15 + $0x4c] sm:$0xf0]  ;;  %v2137_v56 = vld [vmem:[%s2426_s15 + $0x44] sm:$0xf] }
 0x6b4   : > { %1098 = vst [vmem:[#allocation3 + $0x8] sm:$0xff] %v2641_v61  ;;  %v1101_v60 = vmul.f32 %v2641_v61, %v2641_v61 }
 0x6b5   : > { %1331 = vmatpush.bf16.msrb.mxu2 %v2015_v58  ;;  %v1936_v58 = vld [vmem:[%s2426_s15 + $0x50] sm:$0xf0] }
 0x6b6   : > { %1103 = vadd.xlane.f32.xlu0 %v1101_v60  ;;  %v1960_v60 = vld [vmem:[%s2426_s15 + $0x78] sm:$0xf0]  ;;  %v1939_v0 = vor.u32 %v2137_v56, %v1936_v58  ;;  %v2173_v58 = vld [vmem:[%s2421_s12 + $0x60] sm:$0xff] }
 0x6b7   : > { %v2168_v56 = vld [vmem:[%s2421_s12 + $0x38] sm:$0xff] }
 0x6b9   : > { %v1095_v53 = vpop.f32.mrf.mxu3  ;;  %1332 = vmatpush.bf16.msrb.mxu2 %v1999_v8  ;;  %v1920_v8 = vld [vmem:[%s2426_s15 + $0x30] sm:$0xf0] }
 0x6ba   : > { %v2647_v54 = vadd.f32 %v1095_v53, %v2447_v9  ;;  %v2019_v9 = vor.u32 %v2157_v57, %v2016_v59  ;;  %v1963_v53 = vor.u32 %v2142_v52, %v1960_v60  ;;  %v1942_v59 = vld [vmem:[%s2426_s15 + $0x48] sm:$0xf]  ;;  %v1923_v12 = vor.u32 %v2133_v16, %v1920_v8  ;;  %v2163_v16 = vld [vmem:[%s2421_s12 + $0x10] sm:$0xff] }
 0x6bc   : > { %1099 = vst [vmem:[#allocation3] sm:$0xff] %v2647_v54  ;;  %v1102_v55 = vmul.f32 %v2647_v54, %v2647_v54  ;;  %1345 = vmatpush.bf16.msrb.mxu0 %v2019_v9  ;;  %1377 = vmatpush.bf16.msra.mxu3 %v1963_v53  ;;  %v1943_v9 = vor.u32 %v2140_v62, %v1942_v59  ;;  %v2166_v59 = vld [vmem:[%s2421_s12 + $0x28] sm:$0xff]  ;;  %v2172_v62 = vld [vmem:[%s2421_s12 + $0x58] sm:$0xff] }
 0x6bd   : > { %1333 = vmatpush.bf16.msrb.mxu2 %v1983_v22  ;;  %v1903_v22 = vor.u32 %v2131_v19, %v1902_v18 }
 0x6be   : > { %1105 = vadd.xlane.f32.xlu2 %v1102_v55  ;;  %v1934_v55 = vld [vmem:[%s2426_s15 + $0x40] sm:$0xf]  ;;  %1364 = vmatpush.bf16.msrb.mxu1 %v1943_v9 }
 0x6bf   : > { %v1935_v57 = vor.u32 %v2139_v5, %v1934_v55  ;;  %v2175_v5 = vld [vmem:[%s2421_s12 + $0x70] sm:$0xff] }
 0x6c0   : > { %1346 = vmatpush.bf16.msrb.mxu0 %v2003_v13  ;;  %1378 = vmatpush.bf16.msra.mxu3 %v1947_v3  ;;  %v1927_v13 = vor.u32 %v2136_v11, %v1926_v10  ;;  %v2164_v3 = vld [vmem:[%s2421_s12 + $0x18] sm:$0xff]  ;;  %v2169_v10 = vld [vmem:[%s2421_s12 + $0x40] sm:$0xff] }
 0x6c1   : > { %1334 = vmatpush.bf16.msrb.mxu2 %v1967_v38 }
 0x6c2   : > { %1365 = vmatpush.bf16.msrb.mxu1 %v1927_v13 }
 0x6c4   : > { %1347 = vmatpush.bf16.msrb.mxu0 %v1987_v26  ;;  %1379 = vmatpush.bf16.msra.mxu3 %v1931_v17  ;;  %v2161_v17 = vld [vmem:[%s2421_s12] sm:$0xff] }
 0x6c5   : > { %1335 = vmatpush.bf16.msrb.mxu2 %v1951_v46 }
 0x6c6   : > { %1366 = vmatpush.bf16.msrb.mxu1 %v1911_v28 }
 0x6c8   : > { %1348 = vmatpush.bf16.msrb.mxu0 %v1971_v37  ;;  %1380 = vmatpush.bf16.msra.mxu3 %v1915_v32 }
 0x6c9   : > { %1336 = vmatpush.bf16.msrb.mxu2 %v1935_v57  ;;  %v2167_v57 = vld [vmem:[%s2421_s12 + $0x30] sm:$0xff] }
 0x6cc   : > { %1349 = vmatpush.bf16.msrb.mxu0 %v1955_v50  ;;  %v2217_v50 = vld [vmem:[%s460_s21] ss:$0 sm:$0xff] }
 0x6cd   : > { %1337 = vmatpush.bf16.msrb.mxu2 %v1919_v7 }
 0x6d0   : > { %1350 = vmatpush.bf16.msrb.mxu0 %v1939_v0  ;;  %v2165_v0 = vld [vmem:[%s2421_s12 + $0x20] sm:$0xff] }
 0x6d1   : > { %1338 = vmatpush.bf16.msrb.mxu2 %v1903_v22 }
 0x6d4   : > { %1351 = vmatpush.bf16.msrb.mxu0 %v1923_v12 }
 0x6d5   : > { %1601 = vmatpush.bf16.msra.mxu2 %v2168_v56 }
 0x6d8   : > { %1352 = vmatpush.bf16.msrb.mxu0 %v1907_v27 }
 0x6d9   : > { %1602 = vmatpush.bf16.msra.mxu2 %v2167_v57 }
 0x6dd   : > { %1603 = vmatpush.bf16.msra.mxu2 %v2166_v59 }
 0x6e1   : > { %1604 = vmatpush.bf16.msra.mxu2 %v2165_v0 }
 0x6e5   : > { %1605 = vmatpush.bf16.msra.mxu2 %v2164_v3 }
 0x6e9   : > { %1606 = vmatpush.bf16.msra.mxu2 %v2163_v16 }
 0x6ed   : > { %1607 = vmatpush.bf16.msra.mxu2 %v2162_v14 }
 0x6f1   : > { %1608 = vmatpush.bf16.msra.mxu2 %v2161_v17 }
 0x729   : > { %v1104_v21 = vpop.xlane.xlu0 %1103 }
 0x72a   : > { %v1107_v26 = vmul.f32 %v1104_v21, %v2483_v63 }
 0x72c   : > { %v1109_v33 = vadd.f32 1e-06, %v1107_v26 }
 0x72e   : > { %2256 = vrsqrt.f32 %v1109_v33  ;;  %vm1117_vm0 = vweird.f32 %v1109_v33 }
 0x731   : > { %v1106_v34 = vpop.xlane.xlu2 %1105 }
 0x732   : > { %v1108_v38 = vmul.f32 %v1106_v34, %v2483_v63 }
 0x734   : > { %v2257_v31 = vpop.eup %2256  ;;  %v1110_v35 = vadd.f32 1e-06, %v1108_v38 }
 0x735   : > { %v1112_v36 = vmul.f32 %v2257_v31, %v1109_v33  ;;  %vm1118_vm15 = vweird.f32 %v2257_v31 }
 0x736   : > { %2258 = vrsqrt.f32 %v1110_v35  ;;  %vm1119_vm1 = vmor %vm1117_vm0, %vm1118_vm15  ;;  %vm1127_vm3 = vweird.f32 %v1110_v35 }
 0x737   : > { %v1113_v37 = vmul.f32 %v2257_v31, %v1112_v36 }
 0x739   : > { %v1114_v39 = vmul.f32 0.5, %v1113_v37 }
 0x73b   : > { %v1115_v40 = vsub.f32 1.5, %v1114_v39 }
 0x73c   : > { %v2259_v41 = vpop.eup %2258 }
 0x73d   : > { %v1122_v42 = vmul.f32 %v2259_v41, %v1110_v35  ;;  %v1116_v43 = vmul.f32 %v2257_v31, %v1115_v40  ;;  %vm1128_vm2 = vweird.f32 %v2259_v41 }
 0x73e   : > { %vm1129_vm4 = vmor %vm1127_vm3, %vm1128_vm2 }
 0x73f   : > { %v1123_v44 = vmul.f32 %v2259_v41, %v1122_v42  ;;  %v1120_v46 = vsel %vm1119_vm1, %v2257_v31, %v1116_v43 }
 0x740   : > { %v1131_v49 = vmul.f32 %v1120_v46, %v2641_v61  ;;  %v2176_v61 = vld [vmem:[%s2421_s12 + $0x78] sm:$0xff] }
 0x741   : > { %v1124_v45 = vmul.f32 0.5, %v1123_v44  ;;  %1615 = vmatpush.bf16.msra.mxu0 %v2176_v61 }
 0x742   : > { %v1136_v60 = vmul.f32 %v2217_v50, %v1131_v49 }
 0x743   : > { %v1125_v47 = vsub.f32 1.5, %v1124_v45 }
 0x745   : > { %v1126_v48 = vmul.f32 %v2259_v41, %v1125_v47  ;;  %1616 = vmatpush.bf16.msra.mxu0 %v2175_v5 }
 0x747   : > { %v1130_v51 = vsel %vm1129_vm4, %v2259_v41, %v1126_v48 }
 0x748   : > { %v1132_v52 = vmul.f32 %v1130_v51, %v2647_v54  ;;  %v2174_v54 = vld [vmem:[%s2421_s12 + $0x68] sm:$0xff] }
 0x749   : > { %1617 = vmatpush.bf16.msra.mxu0 %v2174_v54 }
 0x74a   : > { %v1137_v53 = vmul.f32 %v2217_v50, %v1132_v52 }
 0x74c   : > { %v1138_v55 = vpack.c.bf16 %v1137_v53, %v1136_v60 }
 0x74d   : > { %1618 = vmatpush.bf16.msra.mxu0 %v2173_v58 }
 0x74e   : > { %1339 = vmatmul.bf16.vlgmr.msrb.gmra.mxu2 %v1138_v55  ;;  %1353 = vmatmul.bf16.vlgmr.msrb.gmra.mxu0 %v1138_v55 }
 0x74f   : > { %1367 = vmatmul.bf16.vlgmr.msrb.gmra.mxu1 %v1138_v55  ;;  %1381 = vmatmul.bf16.vlgmr.msra.gmra.mxu3 %v1138_v55 }
 0x751   : > { %1619 = vmatpush.bf16.msra.mxu0 %v2172_v62 }
 0x755   : > { %1620 = vmatpush.bf16.msra.mxu0 %v2171_v1 }
 0x759   : > { %1621 = vmatpush.bf16.msra.mxu0 %v2170_v4 }
 0x75d   : > { %1622 = vmatpush.bf16.msra.mxu0 %v2169_v10 }
 0x7cb   : > { %v2734_v9 = vpop.f32.mrf.mxu0 }
 0x7cc   : > { %v2029_v2 = vmul.f32 -1.442695, %v2734_v9  ;;  %v1368_v52 = vpop.f32.mrf.mxu1 }
 0x7ce   : > { %2260 = vpow2.f32 %v2029_v2 }
 0x7d1   : > { %v2740_v6 = vpop.f32.mrf.mxu2 }
 0x7d2   : > { %v2028_v7 = vmul.f32 -1.442695, %v2740_v6  ;;  %v1382_v39 = vpop.f32.mrf.mxu3 }
 0x7d3   : > { %v2744_v8 = vpop.f32.mrf.mxu0 }
 0x7d4   : > { %v2261_v11 = vpop.eup %2260  ;;  %2262 = vpow2.f32 %v2028_v7  ;;  %v2031_v12 = vmul.f32 -1.442695, %v2744_v8 }
 0x7d5   : > { %v1400_v13 = vadd.f32 1.0, %v2261_v11 }
 0x7d6   : > { %2264 = vpow2.f32 %v2031_v12 }
 0x7d7   : > { %2266 = vrcp.f32 %v1400_v13  ;;  %v1429_v33 = vand.u32 2147483648, %v1400_v13  ;;  %vm1423_vm6 = vweird.f32 %v1400_v13  ;;  %v1427_v31 = vand.u32 2147483647, %v1400_v13 }
 0x7d9   : > { %v2749_v15 = vpop.f32.mrf.mxu2  ;;  %v1430_v41 = vor.u32 1.1754944e-38, %v1429_v33  ;;  %vm1428_vm9 = vcmp.eq.f32.partialorder %v1427_v31, 8.507059e+37 }
 0x7da   : > { %v2263_v18 = vpop.eup %2262  ;;  %v2030_v19 = vmul.f32 -1.442695, %v2749_v15  ;;  %v1384_v16 = vpop.f32.mrf.mxu3 }
 0x7db   : > { %v1399_v20 = vadd.f32 1.0, %v2263_v18  ;;  %v1370_v18 = vpop.f32.mrf.mxu1 }
 0x7dc   : > { %v2265_v21 = vpop.eup %2264  ;;  %2268 = vpow2.f32 %v2030_v19 }
 0x7dd   : > { %v2267_v22 = vpop.eup %2266  ;;  %2270 = vrcp.f32 %v1399_v20  ;;  %v1402_v24 = vadd.f32 1.0, %v2265_v21  ;;  %v1412_v42 = vand.u32 2147483647, %v1399_v20  ;;  %v1414_v45 = vand.u32 2147483648, %v1399_v20 }
 0x7de   : > { %v1419_v23 = vmul.f32 %v2267_v22, %v1400_v13  ;;  %vm1424_vm5 = vweird.f32 %v2267_v22  ;;  %vm1408_vm11 = vweird.f32 %v1399_v20 }
 0x7df   : > { %2272 = vrcp.f32 %v1402_v24  ;;  %vm2753_vm7 = vmor %vm1423_vm6, %vm1424_vm5  ;;  %v1459_v46 = vand.u32 2147483648, %v1402_v24  ;;  %v1457_v49 = vand.u32 2147483647, %v1402_v24  ;;  %vm2763_vm13 = vcmp.eq.f32.partialorder %v1412_v42, 8.507059e+37 }
 0x7e0   : > { %v1420_v25 = vsub.f32 1.0, %v1419_v23  ;;  %vm1453_vm14 = vweird.f32 %v1402_v24  ;;  %v1415_v5 = vor.u32 1.1754944e-38, %v1414_v45 }
 0x7e1   : > { %v1460_v56 = vor.u32 1.1754944e-38, %v1459_v46  ;;  %vm1458_vm0 = vcmp.eq.f32.partialorder %v1457_v49, 8.507059e+37 }
 0x7e2   : > { %v2269_v26 = vpop.eup %2268  ;;  %v1421_v27 = vmul.f32 %v2267_v22, %v1420_v25 }
 0x7e3   : > { %v2271_v28 = vpop.eup %2270  ;;  %v1401_v29 = vadd.f32 1.0, %v2269_v26 }
 0x7e4   : > { %v1404_v30 = vmul.f32 %v2271_v28, %v1399_v20  ;;  %v1422_v32 = vadd.f32 %v2267_v22, %v1421_v27  ;;  %vm1409_vm8 = vweird.f32 %v2271_v28 }
 0x7e5   : > { %2274 = vrcp.f32 %v1401_v29  ;;  %v2273_v34 = vpop.eup %2272  ;;  %vm2759_vm12 = vmor %vm1408_vm11, %vm1409_vm8  ;;  %v1444_v59 = vand.u32 2147483648, %v1401_v29  ;;  %v1442_v1 = vand.u32 2147483647, %v1401_v29  ;;  %vm1438_vm2 = vweird.f32 %v1401_v29 }
 0x7e6   : > { %v1405_v38 = vsub.f32 1.0, %v1404_v30  ;;  %v1449_v35 = vmul.f32 %v2273_v34, %v1402_v24  ;;  %v1426_v40 = vsel %vm2753_vm7, %v2267_v22, %v1422_v32  ;;  %vm1454_vm10 = vweird.f32 %v2273_v34 }
 0x7e7   : > { %v1431_v50 = vsel %vm1428_vm9, %v1430_v41, %v1426_v40  ;;  %vm1455_vm15 = vmor %vm1453_vm14, %vm1454_vm10  ;;  %v1445_v10 = vor.u32 1.1754944e-38, %v1444_v59  ;;  %vm1443_vm4 = vcmp.eq.f32.partialorder %v1442_v1, 8.507059e+37 }
 0x7e8   : > { %v1406_v37 = vmul.f32 %v2271_v28, %v1405_v38  ;;  %v1450_v43 = vsub.f32 1.0, %v1449_v35  ;;  %v1464_v57 = vmul.f32 %v1431_v50, %v2734_v9 }
 0x7ea   : > { %v1407_v44 = vadd.f32 %v2271_v28, %v1406_v37  ;;  %v1451_v48 = vmul.f32 %v2273_v34, %v1450_v43  ;;  %v1468_v7 = vmul.f32 %v1464_v57, %v1382_v39 }
 0x7eb   : > { %v2275_v47 = vpop.eup %2274 }
 0x7ec   : > { %v1434_v51 = vmul.f32 %v2275_v47, %v1401_v29  ;;  %v1452_v55 = vadd.f32 %v2273_v34, %v1451_v48  ;;  %v1411_v61 = vsel %vm2759_vm12, %v2271_v28, %v1407_v44  ;;  %vm1439_vm1 = vweird.f32 %v2275_v47 }
 0x7ed   : > { %v1416_v2 = vsel %vm2763_vm13, %v1415_v5, %v1411_v61  ;;  %vm1440_vm3 = vmor %vm1438_vm2, %vm1439_vm1 }
 0x7ee   : > { %v1435_v54 = vsub.f32 1.0, %v1434_v51  ;;  %v1456_v58 = vsel %vm1455_vm15, %v2273_v34, %v1452_v55  ;;  %v1463_v9 = vmul.f32 %v1416_v2, %v2740_v6 }
 0x7ef   : > { %v1461_v62 = vsel %vm1458_vm0, %v1460_v56, %v1456_v58 }
 0x7f0   : > { %v1436_v0 = vmul.f32 %v2275_v47, %v1435_v54  ;;  %v1466_v3 = vmul.f32 %v1461_v62, %v2744_v8  ;;  %v1467_v19 = vmul.f32 %v1463_v9, %v1368_v52 }
 0x7f2   : > { %v1437_v4 = vadd.f32 %v2275_v47, %v1436_v0  ;;  %v1470_v11 = vmul.f32 %v1466_v3, %v1384_v16 }
 0x7f4   : > { %v1441_v12 = vsel %vm1440_vm3, %v2275_v47, %v1437_v4  ;;  %v1472_v14 = vpack.c.bf16 %v1470_v11, %v1468_v7 }
 0x7f5   : > { %v1446_v13 = vsel %vm1443_vm4, %v1445_v10, %v1441_v12 }
 0x7f6   : > { %v1465_v17 = vmul.f32 %v1446_v13, %v2749_v15  ;;  %1623 = vmatmul.bf16.vlgmr.msra.gmra.mxu0 %v1472_v14 }
 0x7f8   : > { %v1469_v20 = vmul.f32 %v1465_v17, %v1370_v18 }
 0x7fa   : > { %v1471_v8 = vpack.c.bf16 %v1469_v20, %v1467_v19 }
 0x7fc   : > { %1609 = vmatmul.bf16.vlgmr.msra.gmra.mxu2 %v1471_v8 }
 0x873   : > { %v1624_v21 = vpop.f32.mrf.mxu0 }
 0x87b   : > { %v1626_v24 = vpop.f32.mrf.mxu0 }
 0x87f   : > { %v1610_v22 = vpop.f32.mrf.mxu2 }
 0x880   : > { %v1625_v23 = vadd.f32 %v1624_v21, %v1610_v22 }
 0x882   : > { %1629 = vst [vmem:[#allocation2] sm:$0xff] %v1625_v23 }
 0x886   : > { %1634 = sbr.rel (%p2096_p5) target bundleno = 2343 (0x927), region = 72 }
 0x887   : > { %v1612_v25 = vpop.f32.mrf.mxu2 }
 0x888   : > { %v1627_v26 = vadd.f32 %v1626_v24, %v1612_v25 }
 0x88a   : > { %1630 = vst [vmem:[#allocation2 + $0x8] sm:$0xff] %v1627_v26 }
 0x88b   : > { %v1635_v6 = vld [vmem:[#allocation3 + $0x8] sm:$0xff]  ;;  %v1636_v15 = vld [vmem:[#allocation3] sm:$0xff]  ;;  %v2276_v45 = vld [vmem:[%s2798_s10] ss:$0 sm:$0xff] }
 0x88c   : > { %v1637_v27 = vadd.f32 %v1635_v6, %v1625_v23  ;;  %v1638_v29 = vadd.f32 %v1636_v15, %v1627_v26 }
 0x88e   : > { %v1640_v28 = vmul.f32 %v1637_v27, %v1637_v27  ;;  %v1641_v30 = vmul.f32 %v1638_v29, %v1638_v29 }
 0x890   : > { %1642 = vadd.xlane.f32.xlu0 %v1640_v28 }
 0x898   : > { %1644 = vadd.xlane.f32.xlu0 %v1641_v30 }
 0x903   : > { %v1643_v32 = vpop.xlane.xlu0 %1642 }
 0x904   : > { %v1646_v33 = vmul.f32 %v1643_v32, %v2483_v63 }
 0x906   : > { %v1648_v34 = vadd.f32 1e-06, %v1646_v33 }
 0x908   : > { %2277 = vrsqrt.f32 %v1648_v34  ;;  %vm1656_vm6 = vweird.f32 %v1648_v34 }
 0x90b   : > { %v1645_v38 = vpop.xlane.xlu0 %1644 }
 0x90c   : > { %v1647_v31 = vmul.f32 %v1645_v38, %v2483_v63 }
 0x90e   : > { %v2278_v35 = vpop.eup %2277  ;;  %v1649_v36 = vadd.f32 1e-06, %v1647_v31 }
 0x90f   : > { %v1651_v37 = vmul.f32 %v2278_v35, %v1648_v34  ;;  %vm1657_vm5 = vweird.f32 %v2278_v35 }
 0x910   : > { %2279 = vrsqrt.f32 %v1649_v36  ;;  %vm1658_vm7 = vmor %vm1656_vm6, %vm1657_vm5  ;;  %vm1666_vm9 = vweird.f32 %v1649_v36 }
 0x911   : > { %v1652_v39 = vmul.f32 %v2278_v35, %v1651_v37 }
 0x913   : > { %v1653_v40 = vmul.f32 0.5, %v1652_v39 }
 0x915   : > { %v1654_v41 = vsub.f32 1.5, %v1653_v40 }
 0x916   : > { %v2280_v42 = vpop.eup %2279 }
 0x917   : > { %v1655_v43 = vmul.f32 %v2278_v35, %v1654_v41  ;;  %v1661_v44 = vmul.f32 %v2280_v42, %v1649_v36  ;;  %vm1667_vm8 = vweird.f32 %v2280_v42 }
 0x918   : > { %vm1668_vm10 = vmor %vm1666_vm9, %vm1667_vm8 }
 0x919   : > { %v1659_v46 = vsel %vm1658_vm7, %v2278_v35, %v1655_v43  ;;  %v1662_v47 = vmul.f32 %v2280_v42, %v1661_v44 }
 0x91a   : > { %v1670_v63 = vmul.f32 %v1659_v46, %v1637_v27 }
 0x91b   : > { %v1663_v48 = vmul.f32 0.5, %v1662_v47 }
 0x91c   : > { %v1675_v49 = vmul.f32 %v2276_v45, %v1670_v63 }
 0x91d   : > { %v1664_v50 = vsub.f32 1.5, %v1663_v48 }
 0x91e   : > { %1677 = vst [vmem:[#allocation4] sm:$0xff] %v1675_v49 }
 0x91f   : > { %v1665_v51 = vmul.f32 %v2280_v42, %v1664_v50 }
 0x921   : > { %v1669_v52 = vsel %vm1668_vm10, %v2280_v42, %v1665_v51 }
 0x922   : > { %v1671_v60 = vmul.f32 %v1669_v52, %v1638_v29 }
 0x924   : > { %v1676_v53 = vmul.f32 %v2276_v45, %v1671_v60 }
 0x926   : > { %1678 = vst [vmem:[#allocation4 + $0x8] sm:$0xff] %v1676_v53 }
 0x927 PF: > { %p2181_p6 = scmp.eq.s32.totalorder %s2397_s18, 1  ;;  %s2328_s21 = smov [#allocation4]  }
 0x928   : > { %s1684_s28 = sshll.u32 %s2328_s21, 4  ;;  %s1686_s14 = sshll.u32 %s2799_s11, 4  ;;  %s1685_s28 = int_to_ptr.vmem [resolvable:$true] %s1684_s28  ;;  %s1687_s14 = int_to_ptr.hbm [resolvable:$true] %s1686_s14 }
 0x929   : > { %s2329_s16 = smov 128   ;;  %s2330_s22 = smov 8  }
 0x92a   : > { %2178 = dma.vmem_to_hbm [thread:$0]  (%p2181_p6), %s1685_s28, 256, %s1687_s14, [#allocation5], %s2329_s16, %s2329_s16, %s2330_s22  }
 0x92b   : > { %2314 = dma.done.wait (%p2181_p6), [#allocation5], 256  }
 0x92c   : > { %2316 = vsyncadd (%p2181_p6), [#allocation5], 4294967040 }
 0x92d PF: > { %s2810_s23 = sld [smem:[#allocation7_spill]] }
 0x933   : > { %s22_s17 = sadd.s32 1, %s2810_s23  }
 0x934   : > { %p19_p7 = scmp.ge.s32.totalorder %s22_s17, 4  }
 0x936   :  { %21 = sbr.rel (!%p19_p7) target bundleno = 3 (0x3), region = 114 }
 0x93b   :  { %1703 = vsyncpa [#allocation5], 1 }
 0x93c   :  { %1705 = vsyncpa [#allocation5 + $0x1], 1 }

</bundles_post_ra>
